<compile_context>
chip_gen: v6e
topology: v6e:2x2x1
jax: 0.10.0
libtpu: 0.0.40
codegen_flags: <defaults>
</compile_context>

<pallas_src>
import functools
import math

import jax
import jax.numpy as jnp
from jax.experimental import pallas as pl
from jax.experimental.pallas import tpu as pltpu


# ----------------------------------------------------------------------------
# Fused kernel: conv3x3(+BN1)+ReLU -> conv3x3(+BN2)+ReLU for one (image, strip)
# ----------------------------------------------------------------------------
def _conv_block_kernel(xpad_ref, w1_ref, s1_ref, w2_ref, s2_ref, o_ref, buf_ref,
                       *, H, W, TH, Cin, C):
    h = pl.program_id(1)
    row0 = pl.multiple_of(h * TH, TH)            # first output row of the strip

    # ---- conv1 (+ folded BN1) + ReLU over TH+2 rows (strip + 1-row halo) ----
    # Padded-input rows row0 .. row0+TH+3 cover conv1 output rows row0-1..row0+TH.
    xin = xpad_ref[pl.ds(row0, TH + 4), :, :]            # (TH+4, W+2, Cin) bf16
    # im2col: channel order (dy, dx, ci) matches the wrapper's weight reshape.
    bx1 = jnp.concatenate([xin[:, dx:dx + W, :] for dx in range(3)], axis=-1)
    a1 = jnp.concatenate([bx1[dy:dy + TH + 2] for dy in range(3)], axis=-1)
    acc1 = jnp.dot(a1.reshape((TH + 2) * W, 9 * Cin), w1_ref[...],
                   preferred_element_type=jnp.float32)   # ((TH+2)*W, C) f32
    y1 = jnp.maximum(acc1 + s1_ref[...], 0.0).reshape(TH + 2, W, C)
    # conv2 sees zero padding outside the image: zero halo rows outside [0, H).
    rows = jax.lax.broadcasted_iota(jnp.int32, (TH + 2, 1, 1), 0) + (row0 - 1)
    y1 = jnp.where((rows >= 0) & (rows < H), y1, 0.0)

    # Stage conv1 activation with a 1-column zero ring (conv2's W padding).
    buf_ref[...] = jnp.zeros(buf_ref.shape, buf_ref.dtype)
    buf_ref[:, 1:W + 1, :] = y1

    # ---- conv2 (+ folded BN2) + ReLU over the TH output rows ---------------
    y1p = buf_ref[...]                                   # (TH+2, W+2, C) f32
    bx2 = jnp.concatenate([y1p[:, dx:dx + W, :] for dx in range(3)], axis=-1)
    a2 = jnp.concatenate([bx2[dy:dy + TH] for dy in range(3)], axis=-1)
    acc2 = jnp.dot(a2.reshape(TH * W, 9 * C).astype(jnp.bfloat16), w2_ref[...],
                   preferred_element_type=jnp.float32)   # (TH*W, C) f32
    y2 = jnp.maximum(acc2 + s2_ref[...], 0.0)
    o_ref[...] = y2.reshape(TH, W, C).astype(o_ref.dtype)


# ----------------------------------------------------------------------------
# Wrapper
# ----------------------------------------------------------------------------
# TODO(synk): BatchNorm2d training-mode (batch-statistics) normalization is not
# implemented; the kernel fuses inference-mode (running-stats) BN into the convs.
def _fold_bn(w, b, bn, eps):
    """Fold eval-mode BatchNorm into the preceding conv; return 2D bf16 weight."""
    scale = bn["gamma"] / jnp.sqrt(bn["var"] + eps)               # (Cout,)
    w_folded = (w * scale).astype(jnp.bfloat16)                   # (3,3,Cin,Cout)
    shift = ((b - bn["mean"]) * scale + bn["beta"]).astype(jnp.float32)
    # (3,3,Cin,Cout) -> (9*Cin, Cout); row-major order = (dy, dx, ci).
    w2d = w_folded.reshape(3 * 3 * w.shape[2], w.shape[3])
    return w2d, shift.reshape(1, -1)


def _pick_tile_h(H, target=8):
    th = min(H, target)
    while H % th:
        th -= 1
    return th


def conv_block_forward(params, x_nchw, *, eps=1e-5, tile_h=None):
    """Pallas forward pass of conv_block. Input/output are NCHW like PyTorch."""
    x = jnp.transpose(x_nchw, (0, 2, 3, 1))                       # NCHW -> NHWC
    N, H, W, Cin = x.shape
    C = params["w2"].shape[-1]
    TH = _pick_tile_h(H) if tile_h is None else tile_h
    assert H % TH == 0, (H, TH)

    w1, s1 = _fold_bn(params["w1"], params["b1"], params["bn1"], eps)
    w2, s2 = _fold_bn(params["w2"], params["b2"], params["bn2"], eps)

    # Single zero pad of the (small, Cin-channel) raw input: H by 2 (conv1 pad
    # + conv2 halo), W by 1 (conv1 pad). conv2's own spatial padding is built
    # in-kernel, so the large intermediate activation never touches HBM.
    # Staged in bf16 (MXU operand dtype) to halve the input DMA.
    xpad = jnp.pad(x, ((0, 0), (2, 2), (1, 1), (0, 0))).astype(jnp.bfloat16)

    kernel = functools.partial(_conv_block_kernel, H=H, W=W, TH=TH, Cin=Cin, C=C)
    out = pl.pallas_call(
        kernel,
        grid=(N, H // TH),
        in_specs=[
            # per-image padded input, resident across the strip axis
            pl.BlockSpec((None, H + 4, W + 2, Cin), lambda n, h: (n, 0, 0, 0)),
            pl.BlockSpec((9 * Cin, C), lambda n, h: (0, 0)),
            pl.BlockSpec((1, C), lambda n, h: (0, 0)),
            pl.BlockSpec((9 * C, C), lambda n, h: (0, 0)),
            pl.BlockSpec((1, C), lambda n, h: (0, 0)),
        ],
        out_specs=pl.BlockSpec((None, TH, W, C), lambda n, h: (n, h, 0, 0)),
        out_shape=jax.ShapeDtypeStruct((N, H, W, C), jnp.float32),
        scratch_shapes=[pltpu.VMEM((TH + 2, W + 2, C), jnp.float32)],
        compiler_params=pltpu.CompilerParams(
            dimension_semantics=("parallel", "parallel"),
            vmem_limit_bytes=32 * 1024 * 1024,
        ),
    )(xpad, w1, s1, w2, s2)
    return jnp.transpose(out, (0, 3, 1, 2))                       # NHWC -> NCHW


# ----------------------------------------------------------------------------
# Deterministic params (PyTorch-style conv init, nontrivial BN running stats)
# ----------------------------------------------------------------------------
def init_conv_block_params(key, ch_in, ch_out):
    ks = jax.random.split(key, 12)

    def conv_init(kw_key, kb_key, cin, cout):
        fan_in = cin * 9
        bound = 1.0 / math.sqrt(fan_in)
        w = jax.random.uniform(kw_key, (3, 3, cin, cout), jnp.float32, -bound, bound)
        b = jax.random.uniform(kb_key, (cout,), jnp.float32, -bound, bound)
        return w, b

    def bn_init(kg, kb, km, kv, c):
        return dict(
            gamma=jax.random.uniform(kg, (c,), jnp.float32, 0.8, 1.2),
            beta=jax.random.uniform(kb, (c,), jnp.float32, -0.2, 0.2),
            mean=jax.random.uniform(km, (c,), jnp.float32, -0.2, 0.2),
            var=jax.random.uniform(kv, (c,), jnp.float32, 0.8, 1.2),
        )

    w1, b1 = conv_init(ks[0], ks[1], ch_in, ch_out)
    w2, b2 = conv_init(ks[2], ks[3], ch_out, ch_out)
    bn1 = bn_init(ks[4], ks[5], ks[6], ks[7], ch_out)
    bn2 = bn_init(ks[8], ks[9], ks[10], ks[11], ch_out)
    return dict(w1=w1, b1=b1, bn1=bn1, w2=w2, b2=b2, bn2=bn2)


def conv_block_reference(params, x_nchw, eps=1e-5):
    """Pure-JAX (XLA, f32) reference: Conv3x3 -> BN(eval) -> ReLU, twice."""
    x = jnp.transpose(x_nchw, (0, 2, 3, 1))

    def conv_bn_relu(v, w, b, bn):
        y = jax.lax.conv_general_dilated(
            v, w, window_strides=(1, 1), padding=((1, 1), (1, 1)),
            dimension_numbers=("NHWC", "HWIO", "NHWC"))
        y = y + b
        y = (y - bn["mean"]) * jax.lax.rsqrt(bn["var"] + eps) * bn["gamma"] + bn["beta"]
        return jnp.maximum(y, 0.0)

    y = conv_bn_relu(x, params["w1"], params["b1"], params["bn1"])
    y = conv_bn_relu(y, params["w2"], params["b2"], params["bn2"])
    return jnp.transpose(y, (0, 3, 1, 2))


if __name__ == "__main__":
    key = jax.random.PRNGKey(0)
    pkey, xkey = jax.random.split(key)
    ch_in, ch_out = 4, 16
    N, H, W = 2, 16, 16
    params = init_conv_block_params(pkey, ch_in, ch_out)
    x = jax.random.normal(xkey, (N, ch_in, H, W), jnp.float32)    # NCHW like PyTorch

    fwd = jax.jit(functools.partial(conv_block_forward, tile_h=8))
    out = fwd(params, x)
    jax.block_until_ready(out)
    assert out.shape == (N, ch_out, H, W), out.shape

    ref = conv_block_reference(params, x)
    max_err = float(jnp.max(jnp.abs(out - ref)))
    # bf16 MXU inputs (f32 accumulation) vs pure-f32 XLA reference -> small
    # numeric differences; structural/halo bugs would be O(1).
    assert max_err < 1e-1, max_err
    print("KERNEL_OK")
</pallas_src>

<mosaic_0001>
module attributes {stable_mosaic.version = 11 : i64} {
  func.func @_conv_block_kernel(%arg0: i32, %arg1: i32, %arg2: memref<1x20x18x4xbf16, #tpu.memory_space<vmem>>, %arg3: memref<36x16xbf16, #tpu.memory_space<vmem>>, %arg4: memref<1x16xf32, #tpu.memory_space<vmem>>, %arg5: memref<144x16xbf16, #tpu.memory_space<vmem>>, %arg6: memref<1x16xf32, #tpu.memory_space<vmem>>, %arg7: memref<1x8x16x16xf32, #tpu.memory_space<vmem>>, %arg8: memref<10x18x16xf32, #tpu.memory_space<vmem>>) attributes {dimension_semantics = [#tpu.dimension_semantics<parallel>, #tpu.dimension_semantics<parallel>], iteration_bounds = array<i64: 2, 2>, scalar_prefetch = 0 : i64, scratch_operands = 1 : i64, tpu.core_type = #tpu.core_type<tc>, window_params = [{transform_indices = @transform_0, window_bounds = array<i64: 1, 20, 18, 4>}, {pipeline_mode = #tpu.pipeline_mode<synchronous>, transform_indices = @transform_1, window_bounds = array<i64: 36, 16>}, {pipeline_mode = #tpu.pipeline_mode<synchronous>, transform_indices = @transform_2, window_bounds = array<i64: 1, 16>}, {pipeline_mode = #tpu.pipeline_mode<synchronous>, transform_indices = @transform_3, window_bounds = array<i64: 144, 16>}, {pipeline_mode = #tpu.pipeline_mode<synchronous>, transform_indices = @transform_4, window_bounds = array<i64: 1, 16>}, {transform_indices = @transform_5, window_bounds = array<i64: 1, 8, 16, 16>}]} {
    %c8_i32 = arith.constant 8 : i32
    %0 = arith.muli %arg1, %c8_i32 : i32
    %1 = tpu.assume_multiple %0, 8 : i32
    %c0 = arith.constant 0 : index
    %2 = arith.index_cast %1 : i32 to index
    %c0_0 = arith.constant 0 : index
    %c0_1 = arith.constant 0 : index
    %3 = vector.load %arg2[%c0, %2, %c0_0, %c0_1] : memref<1x20x18x4xbf16, #tpu.memory_space<vmem>>, vector<1x12x18x4xbf16>
    %4 = vector.shape_cast %3 : vector<1x12x18x4xbf16> to vector<12x18x4xbf16>
    %5 = vector.extract_strided_slice %4 {offsets = [0, 0, 0], sizes = [12, 16, 4], strides = [1, 1, 1]} : vector<12x18x4xbf16> to vector<12x16x4xbf16>
    %6 = vector.extract_strided_slice %4 {offsets = [0, 1, 0], sizes = [12, 16, 4], strides = [1, 1, 1]} : vector<12x18x4xbf16> to vector<12x16x4xbf16>
    %7 = vector.extract_strided_slice %4 {offsets = [0, 2, 0], sizes = [12, 16, 4], strides = [1, 1, 1]} : vector<12x18x4xbf16> to vector<12x16x4xbf16>
    %8 = tpu.concatenate %5, %6, %7 in 2 : vector<12x16x4xbf16>, vector<12x16x4xbf16>, vector<12x16x4xbf16> -> vector<12x16x12xbf16>
    %9 = vector.extract_strided_slice %8 {offsets = [0, 0, 0], sizes = [10, 16, 12], strides = [1, 1, 1]} : vector<12x16x12xbf16> to vector<10x16x12xbf16>
    %10 = vector.extract_strided_slice %8 {offsets = [1, 0, 0], sizes = [10, 16, 12], strides = [1, 1, 1]} : vector<12x16x12xbf16> to vector<10x16x12xbf16>
    %11 = vector.extract_strided_slice %8 {offsets = [2, 0, 0], sizes = [10, 16, 12], strides = [1, 1, 1]} : vector<12x16x12xbf16> to vector<10x16x12xbf16>
    %12 = tpu.concatenate %9, %10, %11 in 2 : vector<10x16x12xbf16>, vector<10x16x12xbf16>, vector<10x16x12xbf16> -> vector<10x16x36xbf16>
    %13 = vector.shape_cast %12 : vector<10x16x36xbf16> to vector<160x36xbf16>
    %c0_2 = arith.constant 0 : index
    %c0_3 = arith.constant 0 : index
    %14 = vector.load %arg3[%c0_2, %c0_3] : memref<36x16xbf16, #tpu.memory_space<vmem>>, vector<36x16xbf16>
    %cst = arith.constant dense<0.000000e+00> : vector<160x16xf32>
    %15 = tpu.matmul %13, %14, %cst {dimension_numbers = #tpu.dot_dimension_numbers<[1], [0], [0], [1], [0, 0, 1, 1], [], []>} : vector<160x36xbf16>, vector<36x16xbf16>, vector<160x16xf32> -> vector<160x16xf32>
    %c0_4 = arith.constant 0 : index
    %c0_5 = arith.constant 0 : index
    %16 = vector.load %arg4[%c0_4, %c0_5] : memref<1x16xf32, #tpu.memory_space<vmem>>, vector<1x16xf32>
    %17 = vector.broadcast %16 : vector<1x16xf32> to vector<160x16xf32>
    %18 = arith.addf %15, %17 : vector<160x16xf32>
    %cst_6 = arith.constant 0.000000e+00 : f32
    %19 = vector.broadcast %cst_6 : f32 to vector<160x16xf32>
    %20 = arith.maximumf %18, %19 : vector<160x16xf32>
    %21 = vector.shape_cast %20 : vector<160x16xf32> to vector<10x16x16xf32>
    %22 = tpu.iota {dimensions = array<i32: 0>} : vector<10x1x1xi32>
    %c1_i32 = arith.constant 1 : i32
    %23 = arith.subi %1, %c1_i32 : i32
    %24 = vector.broadcast %23 : i32 to vector<10x1x1xi32>
    %25 = arith.addi %22, %24 : vector<10x1x1xi32>
    %c0_i32 = arith.constant 0 : i32
    %26 = vector.broadcast %c0_i32 : i32 to vector<10x1x1xi32>
    %27 = arith.cmpi sge, %25, %26 : vector<10x1x1xi32>
    %c16_i32 = arith.constant 16 : i32
    %28 = vector.broadcast %c16_i32 : i32 to vector<10x1x1xi32>
    %29 = arith.cmpi slt, %25, %28 : vector<10x1x1xi32>
    %30 = arith.andi %27, %29 : vector<10x1x1xi1>
    %cst_7 = arith.constant 0.000000e+00 : f32
    %31 = vector.shape_cast %30 : vector<10x1x1xi1> to vector<10x1x1xi1>
    %32 = vector.broadcast %31 : vector<10x1x1xi1> to vector<10x16x16xi1>
    %33 = vector.broadcast %cst_7 : f32 to vector<10x16x16xf32>
    %34 = arith.select %32, %21, %33 : vector<10x16x16xi1>, vector<10x16x16xf32>
    %cst_8 = arith.constant 0.000000e+00 : f32
    %35 = vector.broadcast %cst_8 : f32 to vector<10x18x16xf32>
    %c0_9 = arith.constant 0 : index
    %c0_10 = arith.constant 0 : index
    %c0_11 = arith.constant 0 : index
    %36 = vector.load %arg8[%c0_9, %c0_10, %c0_11] : memref<10x18x16xf32, #tpu.memory_space<vmem>>, vector<10x18x16xf32>
    tpu.vector_store %arg8[%c0_9, %c0_10, %c0_11], %35 {strides = array<i32>} : memref<10x18x16xf32, #tpu.memory_space<vmem>>, vector<10x18x16xf32>,
    %c0_12 = arith.constant 0 : index
    %c1 = arith.constant 1 : index
    %c0_13 = arith.constant 0 : index
    %37 = vector.load %arg8[%c0_12, %c1, %c0_13] : memref<10x18x16xf32, #tpu.memory_space<vmem>>, vector<10x16x16xf32>
    tpu.vector_store %arg8[%c0_12, %c1, %c0_13], %34 {strides = array<i32>} : memref<10x18x16xf32, #tpu.memory_space<vmem>>, vector<10x16x16xf32>,
    %c0_14 = arith.constant 0 : index
    %c0_15 = arith.constant 0 : index
    %c0_16 = arith.constant 0 : index
    %38 = vector.load %arg8[%c0_14, %c0_15, %c0_16] : memref<10x18x16xf32, #tpu.memory_space<vmem>>, vector<10x18x16xf32>
    %39 = vector.extract_strided_slice %38 {offsets = [0, 0, 0], sizes = [10, 16, 16], strides = [1, 1, 1]} : vector<10x18x16xf32> to vector<10x16x16xf32>
    %40 = vector.extract_strided_slice %38 {offsets = [0, 1, 0], sizes = [10, 16, 16], strides = [1, 1, 1]} : vector<10x18x16xf32> to vector<10x16x16xf32>
    %41 = vector.extract_strided_slice %38 {offsets = [0, 2, 0], sizes = [10, 16, 16], strides = [1, 1, 1]} : vector<10x18x16xf32> to vector<10x16x16xf32>
    %42 = tpu.concatenate %39, %40, %41 in 2 : vector<10x16x16xf32>, vector<10x16x16xf32>, vector<10x16x16xf32> -> vector<10x16x48xf32>
    %43 = vector.extract_strided_slice %42 {offsets = [0, 0, 0], sizes = [8, 16, 48], strides = [1, 1, 1]} : vector<10x16x48xf32> to vector<8x16x48xf32>
    %44 = vector.extract_strided_slice %42 {offsets = [1, 0, 0], sizes = [8, 16, 48], strides = [1, 1, 1]} : vector<10x16x48xf32> to vector<8x16x48xf32>
    %45 = vector.extract_strided_slice %42 {offsets = [2, 0, 0], sizes = [8, 16, 48], strides = [1, 1, 1]} : vector<10x16x48xf32> to vector<8x16x48xf32>
    %46 = tpu.concatenate %43, %44, %45 in 2 : vector<8x16x48xf32>, vector<8x16x48xf32>, vector<8x16x48xf32> -> vector<8x16x144xf32>
    %47 = vector.shape_cast %46 : vector<8x16x144xf32> to vector<128x144xf32>
    %48 = arith.truncf %47 : vector<128x144xf32> to vector<128x144xbf16>
    %c0_17 = arith.constant 0 : index
    %c0_18 = arith.constant 0 : index
    %49 = vector.load %arg5[%c0_17, %c0_18] : memref<144x16xbf16, #tpu.memory_space<vmem>>, vector<144x16xbf16>
    %cst_19 = arith.constant dense<0.000000e+00> : vector<128x16xf32>
    %50 = tpu.matmul %48, %49, %cst_19 {dimension_numbers = #tpu.dot_dimension_numbers<[1], [0], [0], [1], [0, 0, 1, 1], [], []>} : vector<128x144xbf16>, vector<144x16xbf16>, vector<128x16xf32> -> vector<128x16xf32>
    %c0_20 = arith.constant 0 : index
    %c0_21 = arith.constant 0 : index
    %51 = vector.load %arg6[%c0_20, %c0_21] : memref<1x16xf32, #tpu.memory_space<vmem>>, vector<1x16xf32>
    %52 = vector.broadcast %51 : vector<1x16xf32> to vector<128x16xf32>
    %53 = arith.addf %50, %52 : vector<128x16xf32>
    %cst_22 = arith.constant 0.000000e+00 : f32
    %54 = vector.broadcast %cst_22 : f32 to vector<128x16xf32>
    %55 = arith.maximumf %53, %54 : vector<128x16xf32>
    %56 = vector.shape_cast %55 : vector<128x16xf32> to vector<8x16x16xf32>
    %c0_23 = arith.constant 0 : index
    %c0_24 = arith.constant 0 : index
    %c0_25 = arith.constant 0 : index
    %c0_26 = arith.constant 0 : index
    %57 = vector.load %arg7[%c0_23, %c0_24, %c0_25, %c0_26] : memref<1x8x16x16xf32, #tpu.memory_space<vmem>>, vector<1x8x16x16xf32>
    %58 = vector.shape_cast %57 : vector<1x8x16x16xf32> to vector<8x16x16xf32>
    %59 = vector.shape_cast %56 : vector<8x16x16xf32> to vector<1x8x16x16xf32>
    tpu.vector_store %arg7[%c0_23, %c0_24, %c0_25, %c0_26], %59 {strides = array<i32>} : memref<1x8x16x16xf32, #tpu.memory_space<vmem>>, vector<1x8x16x16xf32>,
    return
  }
  func.func @transform_0(%arg0: i32, %arg1: i32) -> (i32, i32, i32, i32) {
    %c0_i32 = arith.constant 0 : i32
    %c0_i32_0 = arith.constant 0 : i32
    %c0_i32_1 = arith.constant 0 : i32
    %c0_i32_2 = arith.constant 0 : i32
    return %arg0, %c0_i32, %c0_i32_0, %c0_i32_1 : i32, i32, i32, i32
  }
  func.func @transform_1(%arg0: i32, %arg1: i32) -> (i32, i32) {
    %c0_i32 = arith.constant 0 : i32
    %c0_i32_0 = arith.constant 0 : i32
    %c0_i32_1 = arith.constant 0 : i32
    return %c0_i32, %c0_i32_0 : i32, i32
  }
  func.func @transform_2(%arg0: i32, %arg1: i32) -> (i32, i32) {
    %c0_i32 = arith.constant 0 : i32
    %c0_i32_0 = arith.constant 0 : i32
    %c0_i32_1 = arith.constant 0 : i32
    return %c0_i32, %c0_i32_0 : i32, i32
  }
  func.func @transform_3(%arg0: i32, %arg1: i32) -> (i32, i32) {
    %c0_i32 = arith.constant 0 : i32
    %c0_i32_0 = arith.constant 0 : i32
    %c0_i32_1 = arith.constant 0 : i32
    return %c0_i32, %c0_i32_0 : i32, i32
  }
  func.func @transform_4(%arg0: i32, %arg1: i32) -> (i32, i32) {
    %c0_i32 = arith.constant 0 : i32
    %c0_i32_0 = arith.constant 0 : i32
    %c0_i32_1 = arith.constant 0 : i32
    return %c0_i32, %c0_i32_0 : i32, i32
  }
  func.func @transform_5(%arg0: i32, %arg1: i32) -> (i32, i32, i32, i32) {
    %c0_i32 = arith.constant 0 : i32
    %c0_i32_0 = arith.constant 0 : i32
    %c0_i32_1 = arith.constant 0 : i32
    return %arg0, %arg1, %c0_i32, %c0_i32_0 : i32, i32, i32, i32
  }
}

</mosaic_0001>

<bundles_post_ra>
// kernel: conv_block_forward.1
= control target key start
LH: loop header
LB: loop body
LE: loop exit
PB: predicated region body
PF: predicated region fallthrough
CT: control target
= control target key end

     0   :  { %s2367_s18 = smov 0   ;;  %s2369_s19 = smov 0   ;;  %s3272_s0 = inlined_call_operand.vmem [shape: bf16[2,20,18,4], index: 0, kind: input, shape index: {}]   ;;  %s3273_s1 = inlined_call_operand.vmem [shape: bf16[36,16], index: 1, kind: input, shape index: {}]   ;;  %s3274_s2 = inlined_call_operand.vmem [shape: f32[1,16], index: 2, kind: input, shape index: {}]   ;;  %s3275_s3 = inlined_call_operand.vmem [shape: bf16[144,16], index: 3, kind: input, shape index: {}]   ;;  %s3276_s4 = inlined_call_operand.vmem [shape: f32[1,16], index: 4, kind: input, shape index: {}]   ;;  %s3277_s5 = inlined_call_operand.vmem [shape: f32[2,16,16,16], index: 5, kind: output, shape index: {}]  }
   0x1   :  { %s2371_s20 = smov 0   ;;  %s2373_s21 = smov 0  }
   0x2   :  { %s2375_s22 = smov 0  }
   0x3 LB: > { %s24_s23 = sadd.s32 1, %s2317_s20  ;;  %s27_s24 = sadd.s32 1, %s2321_s21  ;;  %s2325_s22 = sphi %s2375_s22, %s15_s22   ;;  %s2321_s21 = sphi %s2373_s21, %s3301_s21   ;;  %s2317_s20 = sphi %s2371_s20, %s3300_s20   ;;  %s2313_s19 = sphi %s2369_s19, %s3299_s19   ;;  %s2309_s18 = sphi %s2367_s18, %s3298_s18  }
   0x4   : > { %p25_p0 = scmp.ge.s32.totalorder %s24_s23, 2  ;;  %p1893_p1 = scmp.ge.s32.totalorder %s2325_s22, 1 }
   0x5   : > { %p201_p2 = scmp.lt.s32.totalorder %s2325_s22, 5 }
   0x6   : > { %s3303_s23 = smov (%p25_p0, %s24_s23), 0  ;;  %s3305_s24 = smov (!%p25_p0, %s27_s24), %s2321_s21 }
   0x7   : > { %p202_p3 = pnand %p1893_p1, %p201_p2  ;;  %p29_p4 = scmp.ge.s32.totalorder %s3305_s24, 2 }
   0x8   : > { %p234_p5 = scmp.lt.s32.totalorder (!%p202_p3), %s2313_s19, 1  ;;  %s1961_s25 = smul.u32 (!%p202_p3), 96, %s2309_s18 }
   0x9   : > { %s3307_s24 = smov (%p29_p4, %s3305_s24), 0  ;;  %205 = sbr.rel (%p202_p3) target bundleno = 983 (0x3d7), region = 40 }
   0xa   : > { %s2327_s6 = smov (!%p202_p3), 8   ;;  %s2328_s7 = smov (!%p202_p3), 4  }
   0xb   : > { %s2329_s14 = smov (!%p202_p3), 12   ;;  %s2330_s15 = smov (!%p202_p3), 24  }
   0xc   : > { %s2700_s16 = sshll.u32 (!%p202_p3), %s2309_s18, 3  ;;  %s2332_s18 = smov (!%p202_p3), 16  }
   0xd   : > { %s1940_s17 = sadd.s32 (!%p202_p3), 4294967295, %s2700_s16  ;;  %s2333_s27 = smov (!%p202_p3), 32  }
   0xe   : > { %s3309_s19 = smov (!%p234_p5, %s2313_s19), 1  ;;  %vm387_vm0 = vsmask.f32 7424  ;;  %vm556_vm1 = vcmask 1046528   ;;  %vm808_vm2 = vcmask 1041408   ;;  %vm617_vm3 = vcmask 31744  }
   0xf   : > { %s2020_s26 = smul.u32 240, %s3309_s19  ;;  %vm642_vm4 = vcmask 64512   ;;  %vm718_vm5 = vcmask 97280   ;;  %vm739_vm6 = vcmask 195584   ;;  %vm787_vm7 = vcmask 293888   ;;  %p242_p6 = scmp.lt.s32.totalorder %s2700_s16, 15 }
  0x10   : > { %vm1026_vm8 = vcmask 130048   ;;  %vm1029_vm9 = vcmask 123904  }
  0x11   : > { %s238_s29 = scalar_lea.vmem %s3272_s0, %s2020_s26  ;;  %s3311_s16 = smov (!%p242_p6, %s2700_s16), 15 }
  0x12   : > { %s2406_s30 = scalar_lea.vmem %s238_s29, %s1961_s25 }
  0x13   : > { %v2409_v0 = vld [vmem:[%s2406_s30 + $0xc] sm:$0xff]   ;;  %v2252_v1 = vld [vmem:[%s2406_s30 + $0x14] ss:$0 sps:$4 sm:$0x11]   ;;  %v2413_v2 = vld [vmem:[%s2406_s30 + $0x18] sm:$0xff]  }
  0x14   : > { %v401_v3 = vshrl.u32 %v2409_v0, 16  ;;  %v403_v4 = vshll.u32 %v2409_v0, 16  ;;  %v408_v5 = vshll.u32 %v2252_v1, 16  ;;  %v560_v6 = vrot.slane %v2409_v0, 1  ;;  %v2423_v16 = vld [vmem:[%s2406_s30 + $0x24] sm:$0xff]   ;;  %v2431_v25 = vld [vmem:[%s2406_s30 + $0x30] sm:$0xff]  }
  0x15   : > { %v561_v7 = vrot.slane %v2252_v1, 1  ;;  %v2254_v8 = vld [vmem:[%s2406_s30 + $0x20] ss:$0 sps:$4 sm:$0x11]   ;;  %v413_v9 = vshrl.u32 %v2413_v2, 16  ;;  %v415_v10 = vshll.u32 %v2413_v2, 16 }
  0x16   : > { %v405_v11 = vrot.slane %v403_v4, 1  ;;  %v410_v12 = vrot.slane %v408_v5, 1  ;;  %v420_v15 = vshll.u32 %v2254_v8, 16  ;;  %v2256_v17 = vld [vmem:[%s2406_s30 + $0x2c] ss:$0 sps:$4 sm:$0x11]  }
  0x17   : > { %v562_v13 = vsel %vm556_vm1, %v560_v6, %v561_v7  ;;  %v417_v14 = vrot.slane %v415_v10, 1  ;;  %v563_v19 = vrot.slane %v2413_v2, 1  ;;  %v564_v20 = vrot.slane %v2254_v8, 1  ;;  %v2258_v29 = vld [vmem:[%s2406_s30 + $0x38] ss:$0 sps:$4 sm:$0x11]  }
  0x18   : > { %v406_v18 = vor.u32 %v405_v11, %v401_v3  ;;  %595 = vrot.lane.b32.xlu1 %v562_v13, %s2327_s6  ;;  %v422_v22 = vrot.slane %v420_v15, 1  ;;  %v425_v23 = vshrl.u32 %v2423_v16, 16  ;;  %v427_v24 = vshll.u32 %v2423_v16, 16  ;;  %v2437_v30 = vld [vmem:[%s2406_s30 + $0x3c] sm:$0xff]   ;;  %v2443_v35 = vld [vmem:[%s2406_s30 + $0x48] sm:$0xff]   ;;  %v2452_v47 = vld [vmem:[%s2406_s30 + $0x54] sm:$0xff]  }
  0x19   : > { %v418_v21 = vor.u32 %v417_v14, %v413_v9  ;;  %v432_v27 = vshll.u32 %v2256_v17, 16  ;;  %v566_v28 = vrot.slane %v2423_v16, 1  ;;  %v567_v33 = vrot.slane %v2256_v17, 1  ;;  %v2260_v41 = vld [vmem:[%s2406_s30 + $0x44] ss:$0 sps:$4 sm:$0x11]  }
  0x1a   : > { %v411_v26 = vsel %vm387_vm0, %v406_v18, %v410_v12  ;;  %v429_v32 = vrot.slane %v427_v24, 1  ;;  %v437_v34 = vshrl.u32 %v2431_v25, 16  ;;  %v439_v37 = vshll.u32 %v2431_v25, 16  ;;  %v2262_v51 = vld [vmem:[%s2406_s30 + $0x50] ss:$0 sps:$4 sm:$0x11]  }
  0x1b   : > { %534 = vrot.lane.b32.xlu0 %v411_v26, %s2328_s7  ;;  %v423_v31 = vsel %vm387_vm0, %v418_v21, %v422_v22  ;;  %v434_v36 = vrot.slane %v432_v27, 1  ;;  %v444_v38 = vshll.u32 %v2258_v29, 16  ;;  %v449_v39 = vshrl.u32 %v2437_v30, 16  ;;  %v2264_v60 = vld [vmem:[%s2406_s30 + $0x5c] ss:$0 sps:$4 sm:$0x11]  }
  0x1c   : > { %v430_v40 = vor.u32 %v429_v32, %v425_v23  ;;  %v451_v42 = vshll.u32 %v2437_v30, 16  ;;  %v441_v43 = vrot.slane %v439_v37, 1  ;;  %v456_v46 = vshll.u32 %v2260_v41, 16  ;;  %v2468_v4 = vld [vmem:[%s2406_s30 + $0x60] sm:$0xff]   ;;  %v2473_v9 = vld [vmem:[%s2406_s30 + $0x6c] sm:$0xff]  }
  0x1d   : > { %v565_v48 = vsel %vm556_vm1, %v563_v19, %v564_v20  ;;  %v446_v50 = vrot.slane %v444_v38, 1  ;;  %v568_v52 = vsel %vm556_vm1, %v566_v28, %v567_v33  ;;  %v463_v55 = vshll.u32 %v2443_v35, 16  ;;  %v2266_v10 = vld [vmem:[%s2406_s30 + $0x68] ss:$0 sps:$4 sm:$0x11]   ;;  %v2488_v28 = vld [vmem:[%s2406_s30 + $0x78] sm:$0xff]  }
  0x1e   : > { %v435_v44 = vsel %vm387_vm0, %v430_v40, %v434_v36  ;;  %v453_v45 = vrot.slane %v451_v42, 1  ;;  %v442_v49 = vor.u32 %v441_v43, %v437_v34  ;;  %v458_v54 = vrot.slane %v456_v46, 1  ;;  %v2268_v20 = vld [vmem:[%s2406_s30 + $0x74] ss:$0 sps:$4 sm:$0x11]   ;;  %v2495_v37 = vld [vmem:[%s2406_s30 + $0x84] sm:$0xff]  }
  0x1f   : > { %536 = vrot.lane.b32.xlu0 %v423_v31, %s2328_s7  ;;  %538 = vrot.lane.b32.xlu1 %v435_v44, %s2328_s7  ;;  %v569_v56 = vrot.slane %v2431_v25, 1  ;;  %v570_v57 = vrot.slane %v2258_v29, 1  ;;  %v572_v58 = vrot.slane %v2437_v30, 1  ;;  %v573_v59 = vrot.slane %v2260_v41, 1 }
  0x20   : > { %v454_v53 = vor.u32 %v453_v45, %v449_v39  ;;  %v475_v61 = vshll.u32 %v2452_v47, 16  ;;  %v447_v62 = vsel %vm387_vm0, %v442_v49, %v446_v50  ;;  %v461_v63 = vshrl.u32 %v2443_v35, 16  ;;  %v2270_v44 = vld [vmem:[%s2406_s30 + $0x80] ss:$0 sps:$4 sm:$0x11]  }
  0x21   : > { %v465_v1 = vrot.slane %v463_v55, 1  ;;  %v468_v3 = vshll.u32 %v2262_v51, 16  ;;  %v473_v6 = vshrl.u32 %v2452_v47, 16  ;;  %v480_v8 = vshll.u32 %v2264_v60, 16 }
  0x22   : > { %v459_v5 = vsel %vm387_vm0, %v454_v53, %v458_v54  ;;  %v477_v7 = vrot.slane %v475_v61, 1  ;;  %v571_v11 = vsel %vm556_vm1, %v569_v56, %v570_v57  ;;  %v574_v12 = vsel %vm556_vm1, %v572_v58, %v573_v59  ;;  %v2513_v58 = vld [vmem:[%s2406_s30] sm:$0xff]  }
  0x23   : > { %597 = vrot.lane.b32.xlu0 %v565_v48, %s2327_s6  ;;  %599 = vrot.lane.b32.xlu1 %v568_v52, %s2327_s6  ;;  %v466_v13 = vor.u32 %v465_v1, %v461_v63  ;;  %v470_v14 = vrot.slane %v468_v3, 1  ;;  %v487_v15 = vshll.u32 %v2468_v4, 16  ;;  %v482_v18 = vrot.slane %v480_v8, 1  ;;  %v2272_v48 = vld [vmem:[%s2406_s30 + $0x8c] ss:$0 sps:$4 sm:$0x11]  }
  0x24   : > { %v478_v17 = vor.u32 %v477_v7, %v473_v6  ;;  %v575_v19 = vrot.slane %v2443_v35, 1  ;;  %v499_v21 = vshll.u32 %v2473_v9, 16  ;;  %v576_v22 = vrot.slane %v2262_v51, 1  ;;  %v2274_v3 = vld [vmem:[%s2406_s30 + $0x8] ss:$0 sps:$4 sm:$0x11]  }
  0x25   : > { %v578_v23 = vrot.slane %v2452_v47, 1  ;;  %v579_v24 = vrot.slane %v2264_v60, 1  ;;  %v485_v26 = vshrl.u32 %v2468_v4, 16  ;;  %v492_v27 = vshll.u32 %v2266_v10, 16  ;;  %s2335_s30 = smov 96  }
  0x26   : > { %v471_v29 = vsel %vm387_vm0, %v466_v13, %v470_v14  ;;  %v489_v31 = vrot.slane %v487_v15, 1  ;;  %v497_v32 = vshrl.u32 %v2473_v9, 16  ;;  %v504_v33 = vshll.u32 %v2268_v20, 16 }
  0x27   : > { %540 = vrot.lane.b32.xlu0 %v447_v62, %s2328_s7  ;;  %542 = vrot.lane.b32.xlu1 %v459_v5, %s2328_s7  ;;  %v483_v34 = vsel %vm387_vm0, %v478_v17, %v482_v18  ;;  %v501_v36 = vrot.slane %v499_v21, 1  ;;  %v494_v38 = vrot.slane %v492_v27, 1  ;;  %v581_v39 = vrot.slane %v2468_v4, 1 }
  0x28   : > { %v511_v40 = vshll.u32 %v2488_v28, 16  ;;  %v577_v41 = vsel %vm556_vm1, %v575_v19, %v576_v22  ;;  %v490_v42 = vor.u32 %v489_v31, %v485_v26  ;;  %v506_v43 = vrot.slane %v504_v33, 1  ;;  %v2275_v31 = vld [vmem:[%s3273_s1 + $0x10] ss:$0 sps:$4 sm:$0x33]   ;;  %v2276_v33 = vld [vmem:[%s3273_s1 + $0x8] sm:$0xff]  }
  0x29   : > { %v580_v45 = vsel %vm556_vm1, %v578_v23, %v579_v24  ;;  %v502_v46 = vor.u32 %v501_v36, %v497_v32  ;;  %v523_v49 = vshll.u32 %v2495_v37, 16  ;;  %v582_v50 = vrot.slane %v2266_v10, 1  ;;  %2019 = vmatprep.subr.msk.bf16.mxu0 %vm808_vm2, %v2275_v31 }
  0x2a   : > { %v584_v51 = vrot.slane %v2473_v9, 1  ;;  %v585_v52 = vrot.slane %v2268_v20, 1  ;;  %v509_v53 = vshrl.u32 %v2488_v28, 16  ;;  %v513_v54 = vrot.slane %v511_v40, 1 }
  0x2b   : > { %601 = vrot.lane.b32.xlu0 %v571_v11, %s2327_s6  ;;  %603 = vrot.lane.b32.xlu1 %v574_v12, %s2327_s6  ;;  %v521_v55 = vshrl.u32 %v2495_v37, 16  ;;  %v495_v56 = vsel %vm387_vm0, %v490_v42, %v494_v38  ;;  %v516_v57 = vshll.u32 %v2270_v44, 16  ;;  %v507_v59 = vsel %vm387_vm0, %v502_v46, %v506_v43 }
  0x2c   : > { %v525_v60 = vrot.slane %v523_v49, 1  ;;  %v528_v61 = vshll.u32 %v2272_v48, 16  ;;  %v583_v62 = vsel %vm556_vm1, %v581_v39, %v582_v50  ;;  %v514_v63 = vor.u32 %v513_v54, %v509_v53 }
  0x2d   : > { %v518_v1 = vrot.slane %v516_v57, 1  ;;  %v391_v5 = vshll.u32 %v2513_v58, 16  ;;  %v586_v6 = vsel %vm556_vm1, %v584_v51, %v585_v52  ;;  %v587_v10 = vrot.slane %v2488_v28, 1 }
  0x2e   : > { %v526_v7 = vor.u32 %v525_v60, %v521_v55  ;;  %v530_v8 = vrot.slane %v528_v61, 1  ;;  %v588_v11 = vrot.slane %v2270_v44, 1  ;;  %v389_v13 = vshrl.u32 %v2513_v58, 16 }
  0x2f   : > { %544 = vrot.lane.b32.xlu0 %v471_v29, %s2328_s7  ;;  %546 = vrot.lane.b32.xlu1 %v483_v34, %s2328_s7  ;;  %v519_v12 = vsel %vm387_vm0, %v514_v63, %v518_v1  ;;  %v393_v14 = vrot.slane %v391_v5, 1  ;;  %v396_v15 = vshll.u32 %v2274_v3, 16  ;;  %v590_v18 = vrot.slane %v2495_v37, 1  ;;  %v2277_v34 = vld [vmem:[%s3273_s1] sm:$0xff]  }
  0x30   : > { %v531_v17 = vsel %vm387_vm0, %v526_v7, %v530_v8  ;;  %v591_v19 = vrot.slane %v2272_v48, 1  ;;  %v589_v20 = vsel %vm556_vm1, %v587_v10, %v588_v11  ;;  %v557_v24 = vrot.slane %v2513_v58, 1 }
  0x31   : > { %v394_v21 = vor.u32 %v393_v14, %v389_v13  ;;  %v398_v22 = vrot.slane %v396_v15, 1  ;;  %v558_v26 = vrot.slane %v2274_v3, 1  ;;  %v810_v32 = vsel %vm808_vm2, %v2275_v31, 0 }
  0x32   : > { %v592_v23 = vsel %vm556_vm1, %v590_v18, %v591_v19  ;;  %1976 = vmatpush3.bf16.msra.mxu0 %v810_v32 }
  0x33   : > { %605 = vrot.lane.b32.xlu0 %v577_v41, %s2327_s6  ;;  %607 = vrot.lane.b32.xlu1 %v580_v45, %s2327_s6  ;;  %v399_v27 = vsel %vm387_vm0, %v394_v21, %v398_v22  ;;  %v559_v29 = vsel %vm556_vm1, %v557_v24, %v558_v26 }
  0x34   : > { %1977 = vmatprep.subr.bf16.mxu0 %v2276_v33 }
  0x36   : > { %1978 = vmatpush3.bf16.msra.mxu0 %v2276_v33 }
  0x37   : > { %548 = vrot.lane.b32.xlu0 %v495_v56, %s2328_s7  ;;  %550 = vrot.lane.b32.xlu1 %v507_v59, %s2328_s7 }
  0x38   : > { %1979 = vmatprep.subr.bf16.mxu0 %v2277_v34 }
  0x3a   : > { %1980 = vmatpush3.bf16.msra.mxu0 %v2277_v34 }
  0x3b   : > { %609 = vrot.lane.b32.xlu0 %v583_v62, %s2327_s6  ;;  %611 = vrot.lane.b32.xlu1 %v586_v6, %s2327_s6 }
  0x3f   : > { %552 = vrot.lane.b32.xlu0 %v519_v12, %s2328_s7  ;;  %554 = vrot.lane.b32.xlu1 %v531_v17, %s2328_s7 }
  0x43   : > { %613 = vrot.lane.b32.xlu0 %v589_v20, %s2327_s6  ;;  %615 = vrot.lane.b32.xlu1 %v592_v23, %s2327_s6 }
  0x47   : > { %532 = vrot.lane.b32.xlu0 %v399_v27, %s2328_s7  ;;  %593 = vrot.lane.b32.xlu1 %v559_v29, %s2327_s6  ;;  %s2336_s6 = smov 48  }
  0x8a   : > { %v596_v36 = vpop.permute.xlu1 %595 }
  0x8d   : > { %v535_v38 = vpop.permute.xlu0 %534 }
  0x8e   : > { %v621_v39 = vsel %vm617_vm3, %v2409_v0, %v535_v38 }
  0x8f   : > { %v2552_v40 = vsel %vm642_vm4, %v621_v39, %v596_v36 }
  0x90   : > { %677 = vrot.lane.b32.xlu0 %v2552_v40, %s2329_s14 }
  0x91   : > { %v537_v41 = vpop.permute.xlu0 %536  ;;  %v539_v42 = vpop.permute.xlu1 %538 }
  0x92   : > { %v623_v43 = vsel %vm617_vm3, %v2413_v2, %v537_v41  ;;  %v625_v0 = vsel %vm617_vm3, %v2423_v16, %v539_v42 }
  0x95   : > { %v598_v44 = vpop.permute.xlu0 %597  ;;  %v600_v45 = vpop.permute.xlu1 %599 }
  0x96   : > { %v2559_v46 = vsel %vm642_vm4, %v623_v43, %v598_v44  ;;  %v2568_v50 = vsel %vm642_vm4, %v625_v0, %v600_v45 }
  0x97   : > { %679 = vrot.lane.b32.xlu1 %v2559_v46, %s2329_s14  ;;  %698 = vrot.lane.b32.xlu0 %v2559_v46, %s2330_s15 }
  0x99   : > { %v541_v48 = vpop.permute.xlu0 %540  ;;  %v543_v49 = vpop.permute.xlu1 %542 }
  0x9a   : > { %v627_v2 = vsel %vm617_vm3, %v2431_v25, %v541_v48  ;;  %v629_v53 = vsel %vm617_vm3, %v2437_v30, %v543_v49 }
  0x9b   : > { %700 = vrot.lane.b32.xlu1 %v2568_v50, %s2330_s15  ;;  %681 = vrot.lane.b32.xlu0 %v2568_v50, %s2329_s14 }
  0x9d   : > { %v602_v16 = vpop.permute.xlu0 %601  ;;  %v604_v51 = vpop.permute.xlu1 %603 }
  0x9e   : > { %v2577_v52 = vsel %vm642_vm4, %v627_v2, %v602_v16  ;;  %v2586_v56 = vsel %vm642_vm4, %v629_v53, %v604_v51 }
  0x9f   : > { %683 = vrot.lane.b32.xlu1 %v2577_v52, %s2329_s14  ;;  %702 = vrot.lane.b32.xlu0 %v2577_v52, %s2330_s15 }
  0xa1   : > { %v545_v54 = vpop.permute.xlu0 %544  ;;  %v547_v55 = vpop.permute.xlu1 %546 }
  0xa2   : > { %v631_v25 = vsel %vm617_vm3, %v2443_v35, %v545_v54  ;;  %v633_v60 = vsel %vm617_vm3, %v2452_v47, %v547_v55 }
  0xa3   : > { %704 = vrot.lane.b32.xlu1 %v2586_v56, %s2330_s15  ;;  %685 = vrot.lane.b32.xlu0 %v2586_v56, %s2329_s14 }
  0xa5   : > { %v606_v30 = vpop.permute.xlu0 %605  ;;  %v608_v57 = vpop.permute.xlu1 %607 }
  0xa6   : > { %v2595_v59 = vsel %vm642_vm4, %v631_v25, %v606_v30  ;;  %v2604_v63 = vsel %vm642_vm4, %v633_v60, %v608_v57  ;;  %v2331_v57 = vmov 0.0  }
  0xa7   : > { %687 = vrot.lane.b32.xlu1 %v2595_v59, %s2329_s14  ;;  %706 = vrot.lane.b32.xlu0 %v2595_v59, %s2330_s15  ;;  %1031 = vst.msk [vmem:[#allocation2 + $0x18] sm:$0xff] %vm1026_vm8, %v2331_v57  ;;  %1032 = vst.msk [vmem:[#allocation2 + $0x20] sm:$0xff] %vm1026_vm8, %v2331_v57 }
  0xa8   : > { %1027 = vst.msk [vmem:[#allocation2] sm:$0xff] %vm1026_vm8, %v2331_v57  ;;  %1028 = vst.msk [vmem:[#allocation2 + $0x8] sm:$0xff] %vm1026_vm8, %v2331_v57 }
  0xa9   : > { %v549_v61 = vpop.permute.xlu0 %548  ;;  %v551_v62 = vpop.permute.xlu1 %550  ;;  %1034 = vst.msk [vmem:[#allocation2 + $0x30] sm:$0xff] %vm1026_vm8, %v2331_v57  ;;  %1035 = vst.msk [vmem:[#allocation2 + $0x38] sm:$0xff] %vm1026_vm8, %v2331_v57 }
  0xaa   : > { %v635_v35 = vsel %vm617_vm3, %v2468_v4, %v549_v61  ;;  %v637_v5 = vsel %vm617_vm3, %v2473_v9, %v551_v62  ;;  %1037 = vst.msk [vmem:[#allocation2 + $0x48] sm:$0xff] %vm1026_vm8, %v2331_v57  ;;  %1038 = vst.msk [vmem:[#allocation2 + $0x50] sm:$0xff] %vm1026_vm8, %v2331_v57  ;;  %v2709_v61 = vld [vmem:[%s3274_s2] ss:$0 sm:$0xff] }
  0xab   : > { %708 = vrot.lane.b32.xlu1 %v2604_v63, %s2330_s15  ;;  %689 = vrot.lane.b32.xlu0 %v2604_v63, %s2329_s14  ;;  %1040 = vst.msk [vmem:[#allocation2 + $0x60] sm:$0xff] %vm1026_vm8, %v2331_v57  ;;  %1041 = vst.msk [vmem:[#allocation2 + $0x68] sm:$0xff] %vm1026_vm8, %v2331_v57 }
  0xac   : > { %1043 = vst.msk [vmem:[#allocation2 + $0x78] sm:$0xff] %vm1026_vm8, %v2331_v57  ;;  %1044 = vst.msk [vmem:[#allocation2 + $0x80] sm:$0xff] %vm1026_vm8, %v2331_v57 }
  0xad   : > { %v610_v47 = vpop.permute.xlu0 %609  ;;  %v612_v1 = vpop.permute.xlu1 %611  ;;  %1046 = vst.msk [vmem:[#allocation2 + $0x90] sm:$0xff] %vm1026_vm8, %v2331_v57  ;;  %1047 = vst.msk [vmem:[#allocation2 + $0x98] sm:$0xff] %vm1026_vm8, %v2331_v57 }
  0xae   : > { %v2613_v3 = vsel %vm642_vm4, %v635_v35, %v610_v47  ;;  %v2622_v7 = vsel %vm642_vm4, %v637_v5, %v612_v1  ;;  %1049 = vst.msk [vmem:[#allocation2 + $0xa8] sm:$0xff] %vm1026_vm8, %v2331_v57  ;;  %1050 = vst.msk [vmem:[#allocation2 + $0xb0] sm:$0xff] %vm1026_vm8, %v2331_v57 }
  0xaf   : > { %691 = vrot.lane.b32.xlu1 %v2613_v3, %s2329_s14  ;;  %710 = vrot.lane.b32.xlu0 %v2613_v3, %s2330_s15  ;;  %1052 = vst.msk [vmem:[#allocation2 + $0xc0] sm:$0xff] %vm1026_vm8, %v2331_v57  ;;  %1053 = vst.msk [vmem:[#allocation2 + $0xc8] sm:$0xff] %vm1026_vm8, %v2331_v57 }
  0xb0   : > { %1055 = vst.msk [vmem:[#allocation2 + $0xd8] sm:$0xff] %vm1026_vm8, %v2331_v57  ;;  %1056 = vst.msk [vmem:[#allocation2 + $0xe0] sm:$0xff] %vm1026_vm8, %v2331_v57 }
  0xb1   : > { %v553_v6 = vpop.permute.xlu0 %552  ;;  %v555_v8 = vpop.permute.xlu1 %554  ;;  %1033 = vst.msk [vmem:[#allocation2 + $0x28] sm:$0x3] %vm1029_vm9, %v2331_v57  ;;  %1030 = vst.msk [vmem:[#allocation2 + $0x10] sm:$0x3] %vm1029_vm9, %v2331_v57 }
  0xb2   : > { %v639_v4 = vsel %vm617_vm3, %v2488_v28, %v553_v6  ;;  %v641_v9 = vsel %vm617_vm3, %v2495_v37, %v555_v8  ;;  %1036 = vst.msk [vmem:[#allocation2 + $0x40] sm:$0x3] %vm1029_vm9, %v2331_v57  ;;  %1039 = vst.msk [vmem:[#allocation2 + $0x58] sm:$0x3] %vm1029_vm9, %v2331_v57 }
  0xb3   : > { %712 = vrot.lane.b32.xlu1 %v2622_v7, %s2330_s15  ;;  %693 = vrot.lane.b32.xlu0 %v2622_v7, %s2329_s14  ;;  %1042 = vst.msk [vmem:[#allocation2 + $0x70] sm:$0x3] %vm1029_vm9, %v2331_v57  ;;  %1045 = vst.msk [vmem:[#allocation2 + $0x88] sm:$0x3] %vm1029_vm9, %v2331_v57 }
  0xb4   : > { %1048 = vst.msk [vmem:[#allocation2 + $0xa0] sm:$0x3] %vm1029_vm9, %v2331_v57  ;;  %1051 = vst.msk [vmem:[#allocation2 + $0xb8] sm:$0x3] %vm1029_vm9, %v2331_v57 }
  0xb5   : > { %v614_v10 = vpop.permute.xlu0 %613  ;;  %v616_v12 = vpop.permute.xlu1 %615  ;;  %1054 = vst.msk [vmem:[#allocation2 + $0xd0] sm:$0x3] %vm1029_vm9, %v2331_v57  ;;  %1057 = vst.msk [vmem:[#allocation2 + $0xe8] sm:$0x3] %vm1029_vm9, %v2331_v57 }
  0xb6   : > { %v664_v11 = vsel %vm642_vm4, %v639_v4, %v614_v10  ;;  %v666_v13 = vsel %vm642_vm4, %v641_v9, %v616_v12 }
  0xb7   : > { %695 = vrot.lane.b32.xlu1 %v664_v11, %s2329_s14  ;;  %714 = vrot.lane.b32.xlu0 %v664_v11, %s2330_s15 }
  0xb9   : > { %v533_v28 = vpop.permute.xlu0 %532  ;;  %v594_v15 = vpop.permute.xlu1 %593 }
  0xba   : > { %v619_v14 = vsel %vm617_vm3, %v2513_v58, %v533_v28 }
  0xbb   : > { %716 = vrot.lane.b32.xlu1 %v666_v13, %s2330_s15  ;;  %v644_v17 = vsel %vm642_vm4, %v619_v14, %v594_v15 }
 0x102   : > { %v678_v37 = vpop.permute.xlu0 %677 }
 0x103   : > { %v720_v18 = vsel %vm718_vm5, %v644_v17, %v678_v37 }
 0x109   : > { %v680_v19 = vpop.permute.xlu1 %679  ;;  %v699_v20 = vpop.permute.xlu0 %698 }
 0x10a   : > { %v741_v21 = vsel %vm739_vm6, %v720_v18, %v699_v20  ;;  %v722_v58 = vsel %vm718_vm5, %v2552_v40, %v680_v19 }
 0x10b   : > { %1981 = vmatprep.mubr.msk.bf16.mxu0 %vm787_vm7, %v741_v21 }
 0x10d   : > { %v701_v22 = vpop.permute.xlu1 %700  ;;  %v682_v23 = vpop.permute.xlu0 %681 }
 0x10e   : > { %v743_v24 = vsel %vm739_vm6, %v722_v58, %v701_v22  ;;  %v724_v26 = vsel %vm718_vm5, %v2559_v46, %v682_v23 }
 0x10f   : > { %1982 = vmatmul.mubr.msk.bf16.vlgmr.msra.gmra.mxu0 %vm787_vm7, %v743_v24 }
 0x111   : > { %v684_v27 = vpop.permute.xlu1 %683  ;;  %v703_v29 = vpop.permute.xlu0 %702 }
 0x112   : > { %v745_v31 = vsel %vm739_vm6, %v724_v26, %v703_v29  ;;  %v726_v32 = vsel %vm718_vm5, %v2568_v50, %v684_v27 }
 0x113   : > { %1985 = vmatprep.mubr.msk.bf16.mxu0 %vm787_vm7, %v745_v31 }
 0x115   : > { %v705_v33 = vpop.permute.xlu1 %704  ;;  %v686_v34 = vpop.permute.xlu0 %685 }
 0x116   : > { %v747_v36 = vsel %vm739_vm6, %v726_v32, %v705_v33  ;;  %v728_v38 = vsel %vm718_vm5, %v2577_v52, %v686_v34 }
 0x117   : > { %1986 = vmatmul.mubr.msk.bf16.gmra.mxu0 %vm787_vm7, %v747_v36 }
 0x119   : > { %v688_v39 = vpop.permute.xlu1 %687  ;;  %v707_v40 = vpop.permute.xlu0 %706 }
 0x11a   : > { %v749_v41 = vsel %vm739_vm6, %v728_v38, %v707_v40  ;;  %v730_v42 = vsel %vm718_vm5, %v2586_v56, %v688_v39 }
 0x11b   : > { %1989 = vmatprep.mubr.msk.bf16.mxu0 %vm787_vm7, %v749_v41 }
 0x11d   : > { %v709_v43 = vpop.permute.xlu1 %708  ;;  %v690_v44 = vpop.permute.xlu0 %689 }
 0x11e   : > { %v751_v45 = vsel %vm739_vm6, %v730_v42, %v709_v43  ;;  %v732_v46 = vsel %vm718_vm5, %v2595_v59, %v690_v44  ;;  %v2703_v59 = vstv %s1940_s17 }
 0x11f   : > { %1990 = vmatmul.mubr.msk.bf16.gmra.mxu0 %vm787_vm7, %v751_v45  ;;  %v947_v60 = vadd.s32 1, %v2703_v59  ;;  %vm956_vm12 = vcmp.ge.s32.totalorder %v2703_v59, 0  ;;  %vm966_vm13 = vcmp.lt.s32.totalorder %v2703_v59, 16  ;;  %v949_v1 = vadd.s32 3, %v2703_v59 }
 0x120   : > { %vm2720_vm15 = vmand %vm956_vm12, %vm966_vm13  ;;  %v948_v8 = vadd.s32 2, %v2703_v59  ;;  %v951_v20 = vadd.s32 5, %v2703_v59  ;;  %v950_v26 = vadd.s32 4, %v2703_v59  ;;  %v953_v44 = vadd.s32 7, %v2703_v59 }
 0x121   : > { %v692_v0 = vpop.permute.xlu1 %691  ;;  %v711_v48 = vpop.permute.xlu0 %710  ;;  %vm957_vm10 = vcmp.ge.s32.totalorder %v947_v60, 0  ;;  %vm967_vm11 = vcmp.lt.s32.totalorder %v947_v60, 16  ;;  %vm959_vm0 = vcmp.ge.s32.totalorder %v949_v1, 0  ;;  %vm969_vm2 = vcmp.lt.s32.totalorder %v949_v1, 16 }
 0x122   : > { %v753_v49 = vsel %vm739_vm6, %v732_v46, %v711_v48  ;;  %v734_v50 = vsel %vm718_vm5, %v2604_v63, %v692_v0  ;;  %vm2714_vm14 = vmand %vm957_vm10, %vm967_vm11  ;;  %vm958_vm3 = vcmp.ge.s32.totalorder %v948_v8, 0  ;;  %vm968_vm4 = vcmp.lt.s32.totalorder %v948_v8, 16 }
 0x123   : > { %1993 = vmatprep.mubr.msk.bf16.mxu0 %vm787_vm7, %v753_v49  ;;  %vm971_vm9 = vcmp.lt.s32.totalorder %v951_v20, 16  ;;  %vm960_vm10 = vcmp.ge.s32.totalorder %v950_v26, 0  ;;  %vm970_vm11 = vcmp.lt.s32.totalorder %v950_v26, 16  ;;  %v954_v35 = vadd.s32 8, %v2703_v59 }
 0x124   : > { %vm2772_vm13 = vmand %vm960_vm10, %vm970_vm11 }
 0x125   : > { %v713_v2 = vpop.permute.xlu1 %712  ;;  %v694_v16 = vpop.permute.xlu0 %693  ;;  %vm974_vm10 = vcmp.lt.s32.totalorder %v954_v35, 16 }
 0x126   : > { %v755_v51 = vsel %vm739_vm6, %v734_v50, %v713_v2  ;;  %v736_v52 = vsel %vm718_vm5, %v2613_v3, %v694_v16  ;;  %v952_v50 = vadd.s32 6, %v2703_v59 }
 0x127   : > { %1994 = vmatmul.mubr.msk.bf16.gmra.mxu0 %vm787_vm7, %v755_v51 }
 0x129   : > { %v696_v53 = vpop.permute.xlu1 %695  ;;  %v715_v54 = vpop.permute.xlu0 %714 }
 0x12a   : > { %v757_v55 = vsel %vm739_vm6, %v736_v52, %v715_v54  ;;  %v738_v56 = vsel %vm718_vm5, %v2622_v7, %v696_v53  ;;  %vm2737_vm5 = vmand %vm959_vm0, %vm969_vm2  ;;  %vm962_vm0 = vcmp.ge.s32.totalorder %v952_v50, 0  ;;  %vm972_vm2 = vcmp.lt.s32.totalorder %v952_v50, 16 }
 0x12b   : > { %1997 = vmatprep.mubr.msk.bf16.mxu0 %vm787_vm7, %v757_v55 }
 0x12d   : > { %v717_v25 = vpop.permute.xlu1 %716 }
 0x12e   : > { %v759_v30 = vsel %vm739_vm6, %v738_v56, %v717_v25  ;;  %vm2746_vm6 = vmand %vm958_vm3, %vm968_vm4 }
 0x12f   : > { %1998 = vmatmul.mubr.msk.bf16.gmra.mxu0 %vm787_vm7, %v759_v30  ;;  %vm961_vm7 = vcmp.ge.s32.totalorder %v951_v20, 0  ;;  %vm2799_vm4 = vmand %vm962_vm0, %vm972_vm2 }
 0x130   : > { %vm2763_vm12 = vmand %vm961_vm7, %vm971_vm9  ;;  %vm964_vm7 = vcmp.ge.s32.totalorder %v954_v35, 0  ;;  %vm1249_vm9 = vcmask 1045504  }
 0x1cf   : > { %v1983_v62 = vpop.f32.mrf.mxu0 }
 0x1d0   : > { %v855_v63 = vadd.f32 %v1983_v62, %v2709_v61 }
 0x1d1   : > { %v846_v47 = vpop.f32.mrf.mxu0 }
 0x1d2   : > { %v927_v3 = vmax.f32 %v855_v63, 0.0  ;;  %v847_v5 = vadd.f32 %v2709_v61, %v846_v47  ;;  %v955_v63 = vadd.s32 9, %v2703_v59 }
 0x1d3   : > { %v1984_v7 = vpop.f32.mrf.mxu0 }
 0x1d4   : > { %v1008_v4 = vsel %vm2714_vm14, %v927_v3, 0.0  ;;  %v925_v9 = vmax.f32 %v847_v5, 0.0  ;;  %v858_v10 = vadd.f32 %v1984_v7, %v2709_v61 }
 0x1d5   : > { %1060 = vst.msk [vmem:[#allocation2 + $0x19] sm:$0xff] %vm1026_vm8, %v1008_v4  ;;  %v849_v11 = vpop.f32.mrf.mxu0 }
 0x1d6   : > { %v1006_v12 = vsel %vm2720_vm15, %v925_v9, 0.0  ;;  %v928_v13 = vmax.f32 %v858_v10, 0.0  ;;  %v850_v28 = vadd.f32 %v2709_v61, %v849_v11 }
 0x1d7   : > { %1058 = vst.msk [vmem:[#allocation2 + $0x1] sm:$0xff] %vm1026_vm8, %v1006_v12  ;;  %v1987_v14 = vpop.f32.mrf.mxu0 }
 0x1d8   : > { %v1009_v15 = vsel %vm2714_vm14, %v928_v13, 0.0  ;;  %v926_v17 = vmax.f32 %v850_v28, 0.0  ;;  %v871_v37 = vadd.f32 %v1987_v14, %v2709_v61  ;;  %vm963_vm14 = vcmp.ge.s32.totalorder %v953_v44, 0 }
 0x1d9   : > { %1061 = vst.msk [vmem:[#allocation2 + $0x21] sm:$0xff] %vm1026_vm8, %v1009_v15  ;;  %v862_v19 = vpop.f32.mrf.mxu0 }
 0x1da   : > { %v1007_v21 = vsel %vm2720_vm15, %v926_v17, 0.0  ;;  %v931_v58 = vmax.f32 %v871_v37, 0.0  ;;  %v863_v22 = vadd.f32 %v2709_v61, %v862_v19  ;;  %vm973_vm15 = vcmp.lt.s32.totalorder %v953_v44, 16 }
 0x1db   : > { %1059 = vst.msk [vmem:[#allocation2 + $0x9] sm:$0xff] %vm1026_vm8, %v1007_v21  ;;  %v1988_v24 = vpop.f32.mrf.mxu0  ;;  %vm2789_vm3 = vmand %vm963_vm14, %vm973_vm15  ;;  %vm1532_vm14 = vcmask 785408  }
 0x1dc   : > { %v1012_v27 = vsel %vm2737_vm5, %v931_v58, 0.0  ;;  %v929_v29 = vmax.f32 %v863_v22, 0.0  ;;  %v874_v31 = vadd.f32 %v1988_v24, %v2709_v61 }
 0x1dd   : > { %1064 = vst.msk [vmem:[#allocation2 + $0x49] sm:$0xff] %vm1026_vm8, %v1012_v27  ;;  %v865_v32 = vpop.f32.mrf.mxu0 }
 0x1de   : > { %v1010_v33 = vsel %vm2746_vm6, %v929_v29, 0.0  ;;  %v932_v34 = vmax.f32 %v874_v31, 0.0  ;;  %v866_v36 = vadd.f32 %v2709_v61, %v865_v32 }
 0x1df   : > { %1062 = vst.msk [vmem:[#allocation2 + $0x31] sm:$0xff] %vm1026_vm8, %v1010_v33  ;;  %v1991_v38 = vpop.f32.mrf.mxu0 }
 0x1e0   : > { %v1013_v39 = vsel %vm2737_vm5, %v932_v34, 0.0  ;;  %v930_v40 = vmax.f32 %v866_v36, 0.0  ;;  %v887_v41 = vadd.f32 %v1991_v38, %v2709_v61  ;;  %v2803_v7 = vld [vmem:[#allocation2 + $0x20] sm:$0xff]  ;;  %vm965_vm5 = vcmp.ge.s32.totalorder %v955_v63, 0 }
 0x1e1   : > { %1065 = vst.msk [vmem:[#allocation2 + $0x51] sm:$0xff] %vm1026_vm8, %v1013_v39  ;;  %v878_v43 = vpop.f32.mrf.mxu0  ;;  %v1145_v20 = vrot.slane %v2803_v7, 1 }
 0x1e2   : > { %v1011_v45 = vsel %vm2746_vm6, %v930_v40, 0.0  ;;  %v935_v46 = vmax.f32 %v887_v41, 0.0  ;;  %v879_v0 = vadd.f32 %v2709_v61, %v878_v43  ;;  %vm975_vm6 = vcmp.lt.s32.totalorder %v955_v63, 16 }
 0x1e3   : > { %1063 = vst.msk [vmem:[#allocation2 + $0x39] sm:$0xff] %vm1026_vm8, %v1011_v45  ;;  %v1992_v49 = vpop.f32.mrf.mxu0  ;;  %vm2834_vm11 = vmand %vm965_vm5, %vm975_vm6 }
 0x1e4   : > { %v1016_v2 = vsel %vm2763_vm12, %v935_v46, 0.0  ;;  %v933_v16 = vmax.f32 %v879_v0, 0.0  ;;  %v890_v51 = vadd.f32 %v1992_v49, %v2709_v61 }
 0x1e5   : > { %1068 = vst.msk [vmem:[#allocation2 + $0x79] sm:$0xff] %vm1026_vm8, %v1016_v2  ;;  %v881_v52 = vpop.f32.mrf.mxu0 }
 0x1e6   : > { %v1014_v53 = vsel %vm2772_vm13, %v933_v16, 0.0  ;;  %v936_v54 = vmax.f32 %v890_v51, 0.0  ;;  %v882_v55 = vadd.f32 %v2709_v61, %v881_v52  ;;  %v2859_v51 = vld [vmem:[#allocation2 + $0x30] sm:$0xff] }
 0x1e7   : > { %1066 = vst.msk [vmem:[#allocation2 + $0x61] sm:$0xff] %vm1026_vm8, %v1014_v53  ;;  %v1995_v56 = vpop.f32.mrf.mxu0 }
 0x1e8   : > { %v1017_v25 = vsel %vm2763_vm12, %v936_v54, 0.0  ;;  %v934_v30 = vmax.f32 %v882_v55, 0.0  ;;  %v903_v57 = vadd.f32 %v1995_v56, %v2709_v61  ;;  %vm2849_vm12 = vmand %vm964_vm7, %vm974_vm10 }
 0x1e9   : > { %1069 = vst.msk [vmem:[#allocation2 + $0x81] sm:$0xff] %vm1026_vm8, %v1017_v25  ;;  %v894_v62 = vpop.f32.mrf.mxu0  ;;  %v1083_v25 = vld [vmem:[#allocation2 + $0x28] sm:$0x3] }
 0x1ea   : > { %v1015_v47 = vsel %vm2772_vm13, %v934_v30, 0.0  ;;  %v939_v1 = vmax.f32 %v903_v57, 0.0  ;;  %v895_v3 = vadd.f32 %v2709_v61, %v894_v62  ;;  %v2810_v10 = vld [vmem:[#allocation2 + $0x38] sm:$0xff]  ;;  %v2812_v11 = vld [vmem:[#allocation2 + $0x40] sm:$0x3]  ;;  %vm1380_vm13 = vcmask 261120  }
 0x1eb   : > { %1067 = vst.msk [vmem:[#allocation2 + $0x69] sm:$0xff] %vm1026_vm8, %v1015_v47  ;;  %v1996_v6 = vpop.f32.mrf.mxu0  ;;  %v1150_v18 = vrot.slane %v2810_v10, 1  ;;  %v1152_v19 = vrot.slane %v2812_v11, 1 }
 0x1ec   : > { %v1020_v8 = vsel %vm2789_vm3, %v939_v1, 0.0  ;;  %v937_v4 = vmax.f32 %v895_v3, 0.0  ;;  %v906_v59 = vadd.f32 %v1996_v6, %v2709_v61  ;;  %v2808_v9 = vld [vmem:[#allocation2 + $0x78] sm:$0xff]  ;;  %v1149_v1 = vrot.slane %v2859_v51, 1 }
 0x1ed   : > { %1072 = vst.msk [vmem:[#allocation2 + $0xa9] sm:$0xff] %vm1026_vm8, %v1020_v8  ;;  %v897_v12 = vpop.f32.mrf.mxu0  ;;  %v1164_v17 = vrot.slane %v2808_v9, 1  ;;  %v1275_v26 = vrot.slane %v2808_v9, 2  ;;  %v1147_v8 = vrot.slane %v1083_v25, 1 }
 0x1ee   : > { %v1018_v13 = vsel %vm2799_vm4, %v937_v4, 0.0  ;;  %v940_v28 = vmax.f32 %v906_v59, 0.0  ;;  %v898_v14 = vadd.f32 %v2709_v61, %v897_v12  ;;  %v2820_v37 = vld [vmem:[#allocation2 + $0x60] sm:$0xff]  ;;  %v1151_v12 = vsel %vm556_vm1, %v1149_v1, %v1150_v18  ;;  %v1089_v1 = vld [vmem:[#allocation2 + $0x58] sm:$0x3] }
 0x1ef   : > { %1070 = vst.msk [vmem:[#allocation2 + $0x91] sm:$0xff] %vm1026_vm8, %v1018_v13  ;;  %v1999_v15 = vpop.f32.mrf.mxu0  ;;  %v1159_v42 = vrot.slane %v2820_v37, 1  ;;  %v1270_v63 = vrot.slane %v2820_v37, 2  ;;  %v1153_v13 = vsel %vm556_vm1, %v1150_v18, %v1152_v19 }
 0x1f0   : > { %v1021_v21 = vsel %vm2789_vm3, %v940_v28, 0.0  ;;  %v938_v58 = vmax.f32 %v898_v14, 0.0  ;;  %v919_v22 = vadd.f32 %v1999_v15, %v2709_v61  ;;  %v2828_v23 = vld [vmem:[#allocation2 + $0x80] sm:$0xff]  ;;  %v1095_v24 = vld [vmem:[#allocation2 + $0x88] sm:$0x3]  ;;  %v2888_v28 = vld [vmem:[#allocation2 + $0x18] sm:$0xff]  ;;  %v2101_v27 = vpack.i.bf16 %v1153_v13, %v1151_v12 }
 0x1f1   : > { %1073 = vst.msk [vmem:[#allocation2 + $0xb1] sm:$0xff] %vm1026_vm8, %v1021_v21  ;;  %v910_v29 = vpop.f32.mrf.mxu0  ;;  %v1165_v31 = vrot.slane %v2828_v23, 1  ;;  %v1167_v32 = vrot.slane %v1095_v24, 1  ;;  %v1276_v33 = vrot.slane %v2828_v23, 2  ;;  %v1278_v34 = vrot.slane %v1095_v24, 2 }
 0x1f2   : > { %v1019_v36 = vsel %vm2799_vm4, %v938_v58, 0.0  ;;  %v943_v38 = vmax.f32 %v919_v22, 0.0  ;;  %v911_v39 = vadd.f32 %v2709_v61, %v910_v29  ;;  %v2843_v40 = vld [vmem:[#allocation2 + $0x68] sm:$0xff]  ;;  %v1092_v41 = vld [vmem:[#allocation2 + $0x70] sm:$0x3]  ;;  %v1144_v29 = vrot.slane %v2888_v28, 1 }
 0x1f3   : > { %1071 = vst.msk [vmem:[#allocation2 + $0x99] sm:$0xff] %vm1026_vm8, %v1019_v36  ;;  %v2000_v44 = vpop.f32.mrf.mxu0  ;;  %v1166_v45 = vsel %vm556_vm1, %v1164_v17, %v1165_v31  ;;  %v1168_v46 = vsel %vm556_vm1, %v1165_v31, %v1167_v32  ;;  %v1160_v0 = vrot.slane %v2843_v40, 1  ;;  %v1162_v48 = vrot.slane %v1092_v41, 1 }
 0x1f4   : > { %v1024_v49 = vsel %vm2834_vm11, %v943_v38, 0.0  ;;  %v941_v50 = vmax.f32 %v911_v39, 0.0  ;;  %v922_v2 = vadd.f32 %v2000_v44, %v2709_v61  ;;  %v2071_v16 = vpack.i.bf16 %v1168_v46, %v1166_v45  ;;  %v2911_v44 = vld [vmem:[#allocation2 + $0xa8] sm:$0xff] }
 0x1f5   : > { %1076 = vst.msk [vmem:[#allocation2 + $0xd9] sm:$0xff] %vm1026_vm8, %v1024_v49  ;;  %v913_v52 = vpop.f32.mrf.mxu0  ;;  %v1161_v53 = vsel %vm556_vm1, %v1159_v42, %v1160_v0  ;;  %v1163_v54 = vsel %vm556_vm1, %v1160_v0, %v1162_v48  ;;  %v1277_v55 = vsel %vm1249_vm9, %v1275_v26, %v1276_v33  ;;  %v1279_v56 = vsel %vm1249_vm9, %v1276_v33, %v1278_v34 }
 0x1f6   : > { %v1022_v30 = vsel %vm2849_vm12, %v941_v50, 0.0  ;;  %v944_v57 = vmax.f32 %v922_v2, 0.0  ;;  %v914_v60 = vadd.f32 %v2709_v61, %v913_v52  ;;  %2072 = vrot.lane.b32.xlu1 %v2071_v16, %s2332_s18  ;;  %v2076_v62 = vpack.i.bf16 %v1163_v54, %v1161_v53  ;;  %v2874_v3 = vld [vmem:[#allocation2 + $0x90] sm:$0xff] }
 0x1f7   : > { %1074 = vst.msk [vmem:[#allocation2 + $0xc1] sm:$0xff] %vm1026_vm8, %v1022_v30  ;;  %v1271_v35 = vrot.slane %v2843_v40, 2  ;;  %v1273_v47 = vrot.slane %v1092_v41, 2  ;;  %v2086_v61 = vpack.i.bf16 %v1279_v56, %v1277_v55  ;;  %v1169_v58 = vrot.slane %v2874_v3, 1 }
 0x1f8   : > { %v1025_v5 = vsel %vm2834_vm11, %v944_v57, 0.0  ;;  %v942_v6 = vmax.f32 %v914_v60, 0.0  ;;  %2077 = vrot.lane.b32.xlu0 %v2076_v62, %s2332_s18  ;;  %v1280_v22 = vrot.slane %v2874_v3, 2  ;;  %v1256_v31 = vrot.slane %v2803_v7, 2  ;;  %v2903_v33 = vld [vmem:[#allocation2 + $0xb0] sm:$0xff] }
 0x1f9   : > { %1077 = vst.msk [vmem:[#allocation2 + $0xe1] sm:$0xff] %vm1026_vm8, %v1025_v5  ;;  %v1272_v4 = vsel %vm1249_vm9, %v1270_v63, %v1271_v35  ;;  %v1274_v59 = vsel %vm1249_vm9, %v1271_v35, %v1273_v47  ;;  %v1258_v32 = vrot.slane %v1083_v25, 2  ;;  %v1101_v34 = vld [vmem:[#allocation2 + $0xb8] sm:$0x3]  ;;  %v1255_v43 = vrot.slane %v2888_v28, 2  ;;  %v2933_v62 = vld [vmem:[#allocation2 + $0x50] sm:$0xff] }
 0x1fa   : > { %v1023_v14 = vsel %vm2849_vm12, %v942_v6, 0.0  ;;  %2087 = vrot.lane.b32.xlu1 %v2086_v61, %s2333_s27  ;;  %v2081_v15 = vpack.i.bf16 %v1274_v59, %v1272_v4  ;;  %v2893_v17 = vld [vmem:[#allocation2 + $0x98] sm:$0xff]  ;;  %v1098_v21 = vld [vmem:[#allocation2 + $0xa0] sm:$0x3]  ;;  %v1146_v45 = vsel %vm556_vm1, %v1144_v29, %v1145_v20  ;;  %v1148_v46 = vsel %vm556_vm1, %v1145_v20, %v1147_v8  ;;  %v2942_v4 = vld [vmem:[#allocation2 + $0x48] sm:$0xff] }
 0x1fb   : > { %1075 = vst.msk [vmem:[#allocation2 + $0xc9] sm:$0xff] %vm1026_vm8, %v1023_v14  ;;  %v1170_v18 = vrot.slane %v2893_v17, 1  ;;  %v1172_v19 = vrot.slane %v1098_v21, 1  ;;  %v1281_v24 = vrot.slane %v2893_v17, 2  ;;  %v1283_v26 = vrot.slane %v1098_v21, 2 }
 0x1fc   : > { %2082 = vrot.lane.b32.xlu0 %v2081_v15, %s2333_s27  ;;  %v1175_v0 = vrot.slane %v2903_v33, 1  ;;  %v1177_v48 = vrot.slane %v1101_v34, 1  ;;  %v1257_v50 = vsel %vm1249_vm9, %v1255_v43, %v1256_v31  ;;  %v1259_v2 = vsel %vm1249_vm9, %v1256_v31, %v1258_v32 }
 0x1fd   : > { %v1171_v36 = vsel %vm556_vm1, %v1169_v58, %v1170_v18  ;;  %v1173_v38 = vsel %vm556_vm1, %v1170_v18, %v1172_v19  ;;  %v1282_v39 = vsel %vm1249_vm9, %v1280_v22, %v1281_v24  ;;  %v1284_v41 = vsel %vm1249_vm9, %v1281_v24, %v1283_v26 }
 0x1fe   : > { %2102 = vrot.lane.b32.xlu1 %v2101_v27, %s2332_s18  ;;  %v2091_v42 = vpack.i.bf16 %v1173_v38, %v1171_v36  ;;  %v2111_v49 = vpack.i.bf16 %v1284_v41, %v1282_v39  ;;  %v1174_v16 = vrot.slane %v2911_v44, 1  ;;  %v1286_v52 = vrot.slane %v2903_v33, 2  ;;  %v2937_v47 = vld [vmem:[#allocation2 + $0xc0] sm:$0xff] }
 0x1ff   : > { %v1288_v53 = vrot.slane %v1101_v34, 2  ;;  %v2096_v54 = vpack.i.bf16 %v1148_v46, %v1146_v45  ;;  %v1261_v20 = vrot.slane %v2810_v10, 2  ;;  %v1178_v30 = vsel %vm556_vm1, %v1175_v0, %v1177_v48 }
 0x200   : > { %2092 = vrot.lane.b32.xlu0 %v2091_v42, %s2332_s18  ;;  %v1176_v25 = vsel %vm556_vm1, %v1174_v16, %v1175_v0  ;;  %v1285_v57 = vrot.slane %v2911_v44, 2  ;;  %v1263_v60 = vrot.slane %v2812_v11, 2  ;;  %v2116_v63 = vpack.i.bf16 %v1259_v2, %v1257_v50  ;;  %v2956_v29 = vld [vmem:[#allocation2 + $0xe0] sm:$0xff]  ;;  %v1107_v31 = vld [vmem:[#allocation2 + $0xe8] sm:$0x3]  ;;  %v2963_v42 = vld [vmem:[#allocation2 + $0xd8] sm:$0xff] }
 0x201   : > { %v1260_v35 = vrot.slane %v2859_v51, 2  ;;  %v1289_v6 = vsel %vm1249_vm9, %v1286_v52, %v1288_v53  ;;  %v2106_v11 = vpack.i.bf16 %v1178_v30, %v1176_v25  ;;  %v1155_v59 = vrot.slane %v2933_v62, 1 }
 0x202   : > { %2112 = vrot.lane.b32.xlu1 %v2111_v49, %s2333_s27  ;;  %v2927_v55 = vld [vmem:[#allocation2 + $0xc8] sm:$0xff]  ;;  %v1104_v56 = vld [vmem:[#allocation2 + $0xd0] sm:$0x3]  ;;  %v1287_v5 = vsel %vm1249_vm9, %v1285_v57, %v1286_v52  ;;  %v1264_v13 = vsel %vm1249_vm9, %v1261_v20, %v1263_v60  ;;  %v1179_v14 = vrot.slane %v2937_v47, 1  ;;  %v1157_v15 = vrot.slane %v1089_v1, 1 }
 0x203   : > { %v1180_v61 = vrot.slane %v2927_v55, 1  ;;  %v1182_v8 = vrot.slane %v1104_v56, 1  ;;  %v1262_v12 = vsel %vm1249_vm9, %v1260_v35, %v1261_v20  ;;  %v2126_v21 = vpack.i.bf16 %v1289_v6, %v1287_v5  ;;  %v2279_v5 = vld [vmem:[%s3275_s3 + $0x30] sm:$0xff]   ;;  %v2280_v6 = vld [vmem:[%s3275_s3 + $0x28] sm:$0xff]  }
 0x204   : > { %2097 = vrot.lane.b32.xlu0 %v2096_v54, %s2332_s18  ;;  %v1154_v58 = vrot.slane %v2942_v4, 1  ;;  %v1291_v19 = vrot.slane %v2927_v55, 2  ;;  %v1293_v24 = vrot.slane %v1104_v56, 2  ;;  %v2121_v26 = vpack.i.bf16 %v1264_v13, %v1262_v12  ;;  %v2285_v12 = vld [vmem:[%s3275_s3] sm:$0xff]  }
 0x205   : > { %v1181_v22 = vsel %vm556_vm1, %v1179_v14, %v1180_v61  ;;  %v1183_v18 = vsel %vm556_vm1, %v1180_v61, %v1182_v8  ;;  %v1266_v27 = vrot.slane %v2933_v62, 2  ;;  %v1158_v34 = vsel %vm556_vm1, %v1155_v59, %v1157_v15  ;;  %v2281_v61 = vld [vmem:[%s3275_s3 + $0x20] sm:$0xff]   ;;  %v2282_v8 = vld [vmem:[%s3275_s3 + $0x18] sm:$0xff]  }
 0x206   : > { %2117 = vrot.lane.b32.xlu1 %v2116_v63, %s2333_s27  ;;  %v1156_v32 = vsel %vm556_vm1, %v1154_v58, %v1155_v59  ;;  %v1290_v36 = vrot.slane %v2937_v47, 2  ;;  %v1268_v38 = vrot.slane %v1089_v1, 2  ;;  %v2141_v39 = vpack.i.bf16 %v1183_v18, %v1181_v22  ;;  %v2278_v63 = vld [vmem:[%s3275_s3 + $0x38] sm:$0xff]   ;;  %v2284_v59 = vld [vmem:[%s3275_s3 + $0x8] sm:$0xff]   ;;  %v2286_v14 = vld [vmem:[%s3275_s3 + $0x40] sm:$0xff]  }
 0x207   : > { %v1265_v41 = vrot.slane %v2942_v4, 2  ;;  %v1294_v45 = vsel %vm1249_vm9, %v1291_v19, %v1293_v24  ;;  %v1296_v46 = vrot.slane %v2956_v29, 2  ;;  %v1298_v0 = vrot.slane %v1107_v31, 2  ;;  %v3010_v22 = vld [vmem:[#allocation2 + $0x8] sm:$0xff]  ;;  %v1080_v18 = vld [vmem:[#allocation2 + $0x10] sm:$0x3] }
 0x208   : > { %2107 = vrot.lane.b32.xlu0 %v2106_v11, %s2332_s18  ;;  %v1292_v43 = vsel %vm1249_vm9, %v1290_v36, %v1291_v19  ;;  %v2131_v48 = vpack.i.bf16 %v1158_v34, %v1156_v32  ;;  %v1269_v50 = vsel %vm1249_vm9, %v1266_v27, %v1268_v38  ;;  %v1295_v2 = vrot.slane %v2963_v42, 2  ;;  %v2283_v11 = vld [vmem:[%s3275_s3 + $0x10] sm:$0xff]   ;;  %v3012_v19 = vld [vmem:[#allocation2] sm:$0xff] }
 0x209   : > { %v1267_v49 = vsel %vm1249_vm9, %v1265_v41, %v1266_v27  ;;  %v1185_v16 = vrot.slane %v2956_v29, 1  ;;  %v1187_v52 = vrot.slane %v1107_v31, 1  ;;  %v2146_v53 = vpack.i.bf16 %v1294_v45, %v1292_v43 }
 0x20a   : > { %2127 = vrot.lane.b32.xlu1 %v2126_v21, %s2333_s27  ;;  %v1297_v54 = vsel %vm1249_vm9, %v1295_v2, %v1296_v46  ;;  %v1299_v20 = vsel %vm1249_vm9, %v1296_v46, %v1298_v0  ;;  %v1184_v56 = vrot.slane %v2963_v42, 1  ;;  %v2136_v25 = vpack.i.bf16 %v1269_v50, %v1267_v49 }
 0x20b   : > { %v1188_v57 = vsel %vm556_vm1, %v1185_v16, %v1187_v52  ;;  %v2156_v60 = vpack.i.bf16 %v1299_v20, %v1297_v54  ;;  %v2334_v35 = vmov 0   ;;  %v1251_v34 = vrot.slane %v3010_v22, 2 }
 0x20c   : > { %2122 = vrot.lane.b32.xlu0 %v2121_v26, %s2333_s27  ;;  %v1186_v30 = vsel %vm556_vm1, %v1184_v56, %v1185_v16  ;;  %2001 = vmatprep.subr.bf16.mxu1 %v2334_v35  ;;  %v1253_v36 = vrot.slane %v1080_v18, 2  ;;  %v1250_v43 = vrot.slane %v3012_v19, 2  ;;  %v1140_v54 = vrot.slane %v3010_v22, 1 }
 0x20d   : > { %1668 = vmatprep.subr.bf16.mxu0 %v2334_v35  ;;  %v2151_v1 = vpack.i.bf16 %v1188_v57, %v1186_v30  ;;  %2010 = vmatpush1.bf16.msra.mxu1 %v2278_v63  ;;  %v1142_v20 = vrot.slane %v1080_v18, 1 }
 0x20e   : > { %2142 = vrot.lane.b32.xlu1 %v2141_v39, %s2332_s18  ;;  %2002 = vmatprep.subr.bf16.mxu1 %v2334_v35  ;;  %v1252_v52 = vsel %vm1249_vm9, %v1250_v43, %v1251_v34 }
 0x20f   : > { %1669 = vmatpush1.bf16.msra.mxu0 %v2278_v63 }
 0x210   : > { %2132 = vrot.lane.b32.xlu0 %v2131_v48, %s2332_s18  ;;  %1670 = vmatprep.subr.bf16.mxu0 %v2334_v35 }
 0x211   : > { %2011 = vmatpush1.bf16.msra.mxu1 %v2279_v5 }
 0x212   : > { %2147 = vrot.lane.b32.xlu1 %v2146_v53, %s2333_s27  ;;  %2003 = vmatprep.subr.bf16.mxu1 %v2334_v35  ;;  %v1254_v53 = vsel %vm1249_vm9, %v1251_v34, %v1253_v36 }
 0x213   : > { %1671 = vmatpush1.bf16.msra.mxu0 %v2279_v5  ;;  %v2181_v57 = vpack.i.bf16 %v1254_v53, %v1252_v52 }
 0x214   : > { %2137 = vrot.lane.b32.xlu0 %v2136_v25, %s2333_s27  ;;  %1672 = vmatprep.subr.bf16.mxu0 %v2334_v35 }
 0x215   : > { %2012 = vmatpush1.bf16.msra.mxu1 %v2280_v6 }
 0x216   : > { %2157 = vrot.lane.b32.xlu1 %v2156_v60, %s2333_s27  ;;  %2004 = vmatprep.subr.bf16.mxu1 %v2334_v35  ;;  %v1139_v60 = vrot.slane %v3012_v19, 1 }
 0x217   : > { %1673 = vmatpush1.bf16.msra.mxu0 %v2280_v6 }
 0x218   : > { %2152 = vrot.lane.b32.xlu0 %v2151_v1, %s2332_s18  ;;  %1674 = vmatprep.subr.bf16.mxu0 %v2334_v35 }
 0x219   : > { %2013 = vmatpush1.bf16.msra.mxu1 %v2281_v61 }
 0x21a   : > { %2005 = vmatprep.subr.bf16.mxu1 %v2334_v35 }
 0x21b   : > { %1675 = vmatpush1.bf16.msra.mxu0 %v2281_v61  ;;  %v1141_v61 = vsel %vm556_vm1, %v1139_v60, %v1140_v54 }
 0x21c   : > { %1676 = vmatprep.subr.bf16.mxu0 %v2334_v35 }
 0x21d   : > { %2014 = vmatpush1.bf16.msra.mxu1 %v2282_v8 }
 0x21e   : > { %2006 = vmatprep.subr.bf16.mxu1 %v2334_v35 }
 0x21f   : > { %1677 = vmatpush1.bf16.msra.mxu0 %v2282_v8  ;;  %v1143_v8 = vsel %vm556_vm1, %v1140_v54, %v1142_v20  ;;  %vm1515_vm1 = vcmask 392192  }
 0x220   : > { %1678 = vmatprep.subr.bf16.mxu0 %v2334_v35 }
 0x221   : > { %2015 = vmatpush1.bf16.msra.mxu1 %v2283_v11 }
 0x222   : > { %2007 = vmatprep.subr.bf16.mxu1 %v2334_v35 }
 0x223   : > { %1679 = vmatpush1.bf16.msra.mxu0 %v2283_v11 }
 0x224   : > { %1680 = vmatprep.subr.bf16.mxu0 %v2334_v35 }
 0x225   : > { %2016 = vmatpush1.bf16.msra.mxu1 %v2284_v59 }
 0x226   : > { %2008 = vmatprep.subr.bf16.mxu1 %v2334_v35 }
 0x227   : > { %1681 = vmatpush1.bf16.msra.mxu0 %v2284_v59 }
 0x228   : > { %1682 = vmatprep.subr.bf16.mxu0 %v2334_v35 }
 0x229   : > { %2017 = vmatpush1.bf16.msra.mxu1 %v2285_v12 }
 0x22a   : > { %2009 = vmatprep.subr.bf16.mxu1 %v2334_v35 }
 0x22b   : > { %1683 = vmatpush1.bf16.msra.mxu0 %v2285_v12 }
 0x22c   : > { %1698 = vmatprep.subr.bf16.mxu0 %v2334_v35 }
 0x22d   : > { %2018 = vmatpush2.bf16.msra.mxu1 %v2286_v14 }
 0x22f   : > { %1699 = vmatpush2.bf16.msra.mxu0 %v2286_v14 }
 0x268   : > { %v2073_v13 = vpop.permute.xlu1 %2072 }
 0x269   : > { %v2075_v15 = vunpack.i.h.bf16 %v2073_v13  ;;  %v2074_v21 = vunpack.i.l.bf16 %v2073_v13 }
 0x26a   : > { %v2078_v58 = vpop.permute.xlu0 %2077 }
 0x26b   : > { %v2080_v24 = vunpack.i.h.bf16 %v2078_v58  ;;  %v2079_v26 = vunpack.i.l.bf16 %v2078_v58  ;;  %v1371_v38 = vsel %vm1026_vm8, %v2828_v23, %v2075_v15  ;;  %v1370_v39 = vsel %vm1026_vm8, %v2808_v9, %v2074_v21 }
 0x26c   : > { %v2088_v27 = vpop.permute.xlu1 %2087 }
 0x26d   : > { %v2090_v31 = vunpack.i.h.bf16 %v2088_v27  ;;  %v2089_v32 = vunpack.i.l.bf16 %v2088_v27  ;;  %v1369_v49 = vsel %vm1026_vm8, %v2843_v40, %v2080_v24  ;;  %v1368_v23 = vsel %vm1026_vm8, %v2820_v37, %v2079_v26 }
 0x26e   : > { %v2083_v41 = vpop.permute.xlu0 %2082  ;;  %v2176_v24 = vpack.i.bf16 %v1143_v8, %v1141_v61 }
 0x26f   : > { %v2085_v45 = vunpack.i.h.bf16 %v2083_v41  ;;  %v2084_v46 = vunpack.i.l.bf16 %v2083_v41  ;;  %v3021_v0 = vsel %vm1380_vm13, %v1370_v39, %v2089_v32  ;;  %v3024_v48 = vsel %vm1380_vm13, %v1371_v38, %v2090_v31 }
 0x270   : > { %v3030_v50 = vpop.permute.xlu1 %2102  ;;  %v2166_v9 = vpack.i.bf16 %v3024_v48, %v3021_v0 }
 0x271   : > { %v3035_v2 = vsel %vm1380_vm13, %v1368_v23, %v2084_v46  ;;  %v3038_v16 = vsel %vm1380_vm13, %v1369_v49, %v2085_v45  ;;  %v2105_v34 = vunpack.i.h.bf16 %v3030_v50 }
 0x272   : > { %2167 = vrot.lane.b32.xlu1 %v2166_v9, %s2335_s30  ;;  %v2093_v40 = vpop.permute.xlu0 %2092  ;;  %v3045_v37 = vpack.i.bf16 %v3038_v16, %v3035_v2 }
 0x273   : > { %v2095_v56 = vunpack.i.h.bf16 %v2093_v40  ;;  %v2094_v25 = vunpack.i.l.bf16 %v2093_v40 }
 0x274   : > { %v2113_v30 = vpop.permute.xlu1 %2112  ;;  %2162 = vrot.lane.b32.xlu0 %v3045_v37, %s2336_s6 }
 0x275   : > { %v1373_v63 = vsel %vm1026_vm8, %v2893_v17, %v2095_v56  ;;  %v1372_v35 = vsel %vm1026_vm8, %v2874_v3, %v2094_v25  ;;  %v2115_v1 = vunpack.i.h.bf16 %v2113_v30  ;;  %v2114_v5 = vunpack.i.l.bf16 %v2113_v30 }
 0x276   : > { %2182 = vrot.lane.b32.xlu1 %v2181_v57, %s2333_s27  ;;  %v2098_v6 = vpop.permute.xlu0 %2097  ;;  %s1897_s27 = sshll.u32 %s3309_s19, 5 }
 0x277   : > { %v2100_v11 = vunpack.i.h.bf16 %v2098_v6  ;;  %v2099_v59 = vunpack.i.l.bf16 %v2098_v6  ;;  %v3059_v12 = vsel %vm1380_vm13, %v1372_v35, %v2114_v5  ;;  %v3062_v13 = vsel %vm1380_vm13, %v1373_v63, %v2115_v1 }
 0x278   : > { %v2118_v17 = vpop.permute.xlu1 %2117  ;;  %2172 = vrot.lane.b32.xlu0 %v2166_v9, %s2336_s6  ;;  %v2196_v3 = vpack.i.bf16 %v3062_v13, %v3059_v12 }
 0x279   : > { %v1363_v14 = vsel %vm1026_vm8, %v2803_v7, %v2100_v11  ;;  %v1362_v15 = vsel %vm1026_vm8, %v2888_v28, %v2099_v59  ;;  %v2120_v21 = vunpack.i.h.bf16 %v2118_v17  ;;  %v2119_v58 = vunpack.i.l.bf16 %v2118_v17 }
 0x27a   : > { %v2108_v18 = vpop.permute.xlu0 %2107  ;;  %2197 = vrot.lane.b32.xlu1 %v2196_v3, %s2335_s30  ;;  %v2104_v7 = vunpack.i.l.bf16 %v3030_v50 }
 0x27b   : > { %v2110_v26 = vunpack.i.h.bf16 %v2108_v18  ;;  %v2109_v27 = vunpack.i.l.bf16 %v2108_v18  ;;  %v3073_v31 = vsel %vm1380_vm13, %v1362_v15, %v2119_v58  ;;  %v3076_v32 = vsel %vm1380_vm13, %v1363_v14, %v2120_v21 }
 0x27c   : > { %v2128_v36 = vpop.permute.xlu1 %2127  ;;  %2177 = vrot.lane.b32.xlu0 %v2176_v24, %s2332_s18  ;;  %v2186_v45 = vpack.i.bf16 %v3076_v32, %v3073_v31  ;;  %s1896_s18 = sshll.u32 %s3311_s16, 1 }
 0x27d   : > { %v1375_v28 = vsel %vm1026_vm8, %v2903_v33, %v2110_v26  ;;  %v1374_v38 = vsel %vm1026_vm8, %v2911_v44, %v2109_v27  ;;  %v2130_v39 = vunpack.i.h.bf16 %v2128_v36  ;;  %v2129_v41 = vunpack.i.l.bf16 %v2128_v36  ;;  %s246_s7 = sadd.s32 %s1897_s27, %s1896_s18 }
 0x27e   : > { %v2123_v43 = vpop.permute.xlu0 %2122  ;;  %2202 = vrot.lane.b32.xlu1 %v2196_v3, %s2336_s6  ;;  %v1365_v33 = vsel %vm1026_vm8, %v2810_v10, %v2105_v34  ;;  %v1364_v44 = vsel %vm1026_vm8, %v2859_v51, %v2104_v7  ;;  %s1898_s10 = sshll.u32 %s246_s7, 3 }
 0x27f   : > { %v2125_v46 = vunpack.i.h.bf16 %v2123_v43  ;;  %v2124_v49 = vunpack.i.l.bf16 %v2123_v43  ;;  %v3089_v23 = vsel %vm1380_vm13, %v1374_v38, %v2129_v41  ;;  %v3092_v50 = vsel %vm1380_vm13, %v1375_v28, %v2130_v39  ;;  %s3208_s13 = scalar_lea.vmem %s3277_s5, %s1898_s10 }
 0x280   : > { %v2143_v9 = vpop.permute.xlu1 %2142  ;;  %2187 = vrot.lane.b32.xlu0 %v2186_v45, %s2336_s6  ;;  %v2206_v52 = vpack.i.bf16 %v3092_v50, %v3089_v23 }
 0x281   : > { %v3102_v53 = vsel %vm1380_vm13, %v1364_v44, %v2124_v49  ;;  %v3105_v40 = vsel %vm1380_vm13, %v1365_v33, %v2125_v46  ;;  %v2145_v54 = vunpack.i.h.bf16 %v2143_v9  ;;  %v2144_v20 = vunpack.i.l.bf16 %v2143_v9 }
 0x282   : > { %v2133_v56 = vpop.permute.xlu0 %2132  ;;  %2207 = vrot.lane.b32.xlu1 %v2206_v52, %s2335_s30  ;;  %v2191_v10 = vpack.i.bf16 %v3105_v40, %v3102_v53 }
 0x283   : > { %v2135_v51 = vunpack.i.h.bf16 %v2133_v56  ;;  %v2134_v25 = vunpack.i.l.bf16 %v2133_v56  ;;  %v1377_v63 = vsel %vm1026_vm8, %v2927_v55, %v2145_v54  ;;  %v1376_v35 = vsel %vm1026_vm8, %v2937_v47, %v2144_v20 }
 0x284   : > { %v2148_v30 = vpop.permute.xlu1 %2147  ;;  %2192 = vrot.lane.b32.xlu0 %v2191_v10, %s2335_s30 }
 0x285   : > { %v2150_v57 = vunpack.i.h.bf16 %v2148_v30  ;;  %v2149_v60 = vunpack.i.l.bf16 %v2148_v30  ;;  %v1367_v11 = vsel %vm1026_vm8, %v2933_v62, %v2135_v51  ;;  %v1366_v59 = vsel %vm1026_vm8, %v2942_v4, %v2134_v25 }
 0x286   : > { %v2138_v1 = vpop.permute.xlu0 %2137  ;;  %2217 = vrot.lane.b32.xlu1 %v2206_v52, %s2336_s6 }
 0x287   : > { %v2140_v5 = vunpack.i.h.bf16 %v2138_v1  ;;  %v2139_v6 = vunpack.i.l.bf16 %v2138_v1  ;;  %v1397_v61 = vsel %vm1380_vm13, %v1376_v35, %v2149_v60  ;;  %v1398_v8 = vsel %vm1380_vm13, %v1377_v63, %v2150_v57 }
 0x288   : > { %2212 = vrot.lane.b32.xlu0 %v2191_v10, %s2336_s6  ;;  %v2231_v55 = vpack.i.bf16 %v1398_v8, %v1397_v61  ;;  %v2158_v17 = vpop.permute.xlu1 %2157 }
 0x289   : > { %v1387_v47 = vsel %vm1380_vm13, %v1366_v59, %v2139_v6  ;;  %v1388_v3 = vsel %vm1380_vm13, %v1367_v11, %v2140_v5  ;;  %v2160_v18 = vunpack.i.h.bf16 %v2158_v17  ;;  %v2159_v24 = vunpack.i.l.bf16 %v2158_v17 }
 0x28a   : > { %v2153_v14 = vpop.permute.xlu0 %2152  ;;  %2232 = vrot.lane.b32.xlu1 %v2231_v55, %s2335_s30  ;;  %v2221_v15 = vpack.i.bf16 %v1388_v3, %v1387_v47 }
 0x28b   : > { %v2155_v21 = vunpack.i.h.bf16 %v2153_v14  ;;  %v2154_v58 = vunpack.i.l.bf16 %v2153_v14 }
 0x28c   : > { %2222 = vrot.lane.b32.xlu0 %v2221_v15, %s2335_s30 }
 0x28d   : > { %v1379_v62 = vsel %vm1026_vm8, %v2956_v29, %v2155_v21  ;;  %v1378_v4 = vsel %vm1026_vm8, %v2963_v42, %v2154_v58 }
 0x28e   : > { %2237 = vrot.lane.b32.xlu1 %v2231_v55, %s2336_s6  ;;  %v1399_v26 = vsel %vm1380_vm13, %v1378_v4, %v2159_v24  ;;  %v1400_v27 = vsel %vm1380_vm13, %v1379_v62, %v2160_v18 }
 0x28f   : > { %v2246_v34 = vpack.i.bf16 %v1400_v27, %v1399_v26 }
 0x290   : > { %2227 = vrot.lane.b32.xlu0 %v2221_v15, %s2336_s6 }
 0x292   : > { %2247 = vrot.lane.b32.xlu1 %v2246_v34, %s2335_s30 }
 0x294   : > { %2242 = vrot.lane.b32.xlu0 %v3045_v37, %s2335_s30 }
 0x2e4   : > { %v2168_v7 = vpop.permute.xlu1 %2167 }
 0x2e5   : > { %v2170_v36 = vunpack.i.h.bf16 %v2168_v7  ;;  %v2169_v29 = vunpack.i.l.bf16 %v2168_v7 }
 0x2e6   : > { %v2163_v28 = vpop.permute.xlu0 %2162 }
 0x2e7   : > { %v2165_v42 = vunpack.i.h.bf16 %v2163_v28  ;;  %v2164_v38 = vunpack.i.l.bf16 %v2163_v28  ;;  %v1556_v39 = vpack.c.bf16 %v2170_v36, %v2169_v29 }
 0x2e8   : > { %v2183_v41 = vpop.permute.xlu1 %2182 }
 0x2e9   : > { %v1523_v43 = vsel %vm1515_vm1, %v1388_v3, %v2165_v42  ;;  %v1522_v45 = vsel %vm1515_vm1, %v1387_v47, %v2164_v38  ;;  %1954 = vmatprep.mubr.msk.bf16.mxu1 %vm1026_vm8, %v1556_v39  ;;  %v2185_v8 = vunpack.i.h.bf16 %v2183_v41  ;;  %v2184_v11 = vunpack.i.l.bf16 %v2183_v41 }
 0x2ea   : > { %v2173_v46 = vpop.permute.xlu0 %2172  ;;  %v1539_v49 = vsel %vm1532_vm14, %v1522_v45, %v2169_v29  ;;  %v1540_v37 = vsel %vm1532_vm14, %v1523_v43, %v2170_v36 }
 0x2eb   : > { %v2175_v33 = vunpack.i.h.bf16 %v2173_v46  ;;  %v2174_v44 = vunpack.i.l.bf16 %v2173_v46  ;;  %v1555_v9 = vpack.c.bf16 %v1540_v37, %v1539_v49 }
 0x2ec   : > { %v2198_v52 = vpop.permute.xlu1 %2197 }
 0x2ed   : > { %v1525_v54 = vsel %vm1515_vm1, %v3038_v16, %v2175_v33  ;;  %v1524_v20 = vsel %vm1515_vm1, %v3035_v2, %v2174_v44  ;;  %v2200_v56 = vunpack.i.h.bf16 %v2198_v52  ;;  %v2199_v10 = vunpack.i.l.bf16 %v2198_v52  ;;  %1725 = vmatmul.mubr.bf16.vlgmr.msra.gmra.mxu1 %v1555_v9 }
 0x2ee   : > { %v2178_v51 = vpop.permute.xlu0 %2177 }
 0x2ef   : > { %v1558_v25 = vpack.c.bf16 %v2200_v56, %v2199_v10  ;;  %v2180_v30 = vunpack.i.h.bf16 %v2178_v51  ;;  %v2179_v57 = vunpack.i.l.bf16 %v2178_v51  ;;  %v1541_v63 = vsel %vm1532_vm14, %v1524_v20, %v2199_v10 }
 0x2f0   : > { %v2203_v60 = vpop.permute.xlu1 %2202  ;;  %v1542_v35 = vsel %vm1532_vm14, %v1525_v54, %v2200_v56 }
 0x2f1   : > { %1955 = vmatprep.mubr.msk.bf16.mxu1 %vm1026_vm8, %v1558_v25  ;;  %v2205_v1 = vunpack.i.h.bf16 %v2203_v60  ;;  %v1361_v16 = vsel %vm1026_vm8, %v3010_v22, %v2180_v30  ;;  %v1360_v2 = vsel %vm1026_vm8, %v3012_v19, %v2179_v57  ;;  %v2204_v6 = vunpack.i.l.bf16 %v2203_v60 }
 0x2f2   : > { %v2188_v5 = vpop.permute.xlu0 %2187  ;;  %v1557_v61 = vpack.c.bf16 %v1542_v35, %v1541_v63  ;;  %v1381_v15 = vsel %vm1380_vm13, %v1360_v2, %v2184_v11  ;;  %v1382_v22 = vsel %vm1380_vm13, %v1361_v16, %v2185_v8 }
 0x2f3   : > { %v2190_v59 = vunpack.i.h.bf16 %v2188_v5  ;;  %v2189_v55 = vunpack.i.l.bf16 %v2188_v5  ;;  %v1527_v14 = vsel %vm1515_vm1, %v3024_v48, %v2205_v1  ;;  %v1526_v19 = vsel %vm1515_vm1, %v3021_v0, %v2204_v6 }
 0x2f4   : > { %v2208_v17 = vpop.permute.xlu1 %2207 }
 0x2f5   : > { %v2210_v47 = vunpack.i.h.bf16 %v2208_v17  ;;  %v2209_v3 = vunpack.i.l.bf16 %v2208_v17  ;;  %1733 = vmatmul.mubr.bf16.gmra.mxu1 %v1557_v61  ;;  %v1516_v62 = vsel %vm1515_vm1, %v1381_v15, %v2189_v55  ;;  %v1517_v4 = vsel %vm1515_vm1, %v1382_v22, %v2190_v59 }
 0x2f6   : > { %v2193_v21 = vpop.permute.xlu0 %2192 }
 0x2f7   : > { %v1560_v58 = vpack.c.bf16 %v2210_v47, %v2209_v3  ;;  %v2195_v18 = vunpack.i.h.bf16 %v2193_v21  ;;  %v2194_v24 = vunpack.i.l.bf16 %v2193_v21  ;;  %v1543_v27 = vsel %vm1532_vm14, %v1526_v19, %v2209_v3 }
 0x2f8   : > { %v2218_v26 = vpop.permute.xlu1 %2217  ;;  %v1544_v48 = vsel %vm1532_vm14, %v1527_v14, %v2210_v47 }
 0x2f9   : > { %v1533_v34 = vsel %vm1532_vm14, %v1516_v62, %v2194_v24  ;;  %v1534_v7 = vsel %vm1532_vm14, %v1517_v4, %v2195_v18  ;;  %v1550_v36 = vpack.c.bf16 %v2195_v18, %v2194_v24  ;;  %1956 = vmatprep.mubr.msk.bf16.mxu1 %vm1026_vm8, %v1560_v58  ;;  %v2220_v29 = vunpack.i.h.bf16 %v2218_v26 }
 0x2fa   : > { %v1549_v0 = vpack.c.bf16 %v1534_v7, %v1533_v34  ;;  %v2213_v28 = vpop.permute.xlu0 %2212  ;;  %v2219_v42 = vunpack.i.l.bf16 %v2218_v26  ;;  %v1559_v38 = vpack.c.bf16 %v1544_v48, %v1543_v27 }
 0x2fb   : > { %1951 = vmatprep.mubr.msk.bf16.mxu0 %vm1026_vm8, %v1550_v36  ;;  %v2214_v39 = vunpack.i.l.bf16 %v2213_v28  ;;  %v2215_v43 = vunpack.i.h.bf16 %v2213_v28  ;;  %v1529_v49 = vsel %vm1515_vm1, %v3062_v13, %v2220_v29 }
 0x2fc   : > { %v2233_v41 = vpop.permute.xlu1 %2232  ;;  %1701 = vmatmul.mubr.bf16.vlgmr.msra.gmra.mxu0 %v1549_v0  ;;  %v1528_v33 = vsel %vm1515_vm1, %v3059_v12, %v2219_v42 }
 0x2fd   : > { %v2235_v45 = vunpack.i.h.bf16 %v2233_v41  ;;  %v2234_v46 = vunpack.i.l.bf16 %v2233_v41  ;;  %1741 = vmatmul.mubr.bf16.gmra.mxu1 %v1559_v38  ;;  %v1518_v54 = vsel %vm1515_vm1, %v3073_v31, %v2214_v39  ;;  %v1519_v51 = vsel %vm1515_vm1, %v3076_v32, %v2215_v43 }
 0x2fe   : > { %v2223_v37 = vpop.permute.xlu0 %2222 }
 0x2ff   : > { %v1562_v44 = vpack.c.bf16 %v2235_v45, %v2234_v46  ;;  %v2225_v9 = vunpack.i.h.bf16 %v2223_v37  ;;  %v2224_v52 = vunpack.i.l.bf16 %v2223_v37  ;;  %v1545_v56 = vsel %vm1532_vm14, %v1528_v33, %v2234_v46 }
 0x300   : > { %v2238_v20 = vpop.permute.xlu1 %2237  ;;  %v1546_v10 = vsel %vm1532_vm14, %v1529_v49, %v2235_v45 }
 0x301   : > { %v1552_v25 = vpack.c.bf16 %v2225_v9, %v2224_v52  ;;  %1957 = vmatprep.mubr.msk.bf16.mxu1 %vm1026_vm8, %v1562_v44  ;;  %v1535_v13 = vsel %vm1532_vm14, %v1518_v54, %v2224_v52  ;;  %v2240_v12 = vunpack.i.h.bf16 %v2238_v20  ;;  %v1536_v57 = vsel %vm1532_vm14, %v1519_v51, %v2225_v9 }
 0x302   : > { %v2228_v30 = vpop.permute.xlu0 %2227  ;;  %v2239_v60 = vunpack.i.l.bf16 %v2238_v20  ;;  %v1561_v31 = vpack.c.bf16 %v1546_v10, %v1545_v56  ;;  %v1551_v5 = vpack.c.bf16 %v1536_v57, %v1535_v13 }
 0x303   : > { %1952 = vmatprep.mubr.msk.bf16.mxu0 %vm1026_vm8, %v1552_v25  ;;  %v2230_v63 = vunpack.i.h.bf16 %v2228_v30  ;;  %v2229_v35 = vunpack.i.l.bf16 %v2228_v30  ;;  %v1531_v32 = vsel %vm1515_vm1, %v3092_v50, %v2240_v12 }
 0x304   : > { %v2248_v1 = vpop.permute.xlu1 %2247  ;;  %1709 = vmatmul.mubr.bf16.gmra.mxu0 %v1551_v5  ;;  %v1530_v61 = vsel %vm1515_vm1, %v3089_v23, %v2239_v60 }
 0x305   : > { %v2250_v16 = vunpack.i.h.bf16 %v2248_v1  ;;  %v2249_v2 = vunpack.i.l.bf16 %v2248_v1  ;;  %1749 = vmatmul.mubr.bf16.gmra.mxu1 %v1561_v31  ;;  %v1521_v55 = vsel %vm1515_vm1, %v3105_v40, %v2230_v63  ;;  %v1520_v17 = vsel %vm1515_vm1, %v3102_v53, %v2229_v35  ;;  %v3202_v53 = vld [vmem:[%s3276_s4] ss:$0 sm:$0xff] }
 0x306   : > { %v2243_v6 = vpop.permute.xlu0 %2242 }
 0x307   : > { %v1564_v8 = vpack.c.bf16 %v2250_v16, %v2249_v2  ;;  %v2245_v11 = vunpack.i.h.bf16 %v2243_v6  ;;  %v2244_v59 = vunpack.i.l.bf16 %v2243_v6  ;;  %v1547_v47 = vsel %vm1532_vm14, %v1530_v61, %v2249_v2 }
 0x308   : > { %v1548_v50 = vsel %vm1532_vm14, %v1531_v32, %v2250_v16 }
 0x309   : > { %v1554_v3 = vpack.c.bf16 %v2245_v11, %v2244_v59  ;;  %1958 = vmatprep.mubr.msk.bf16.mxu1 %vm1026_vm8, %v1564_v8  ;;  %v1537_v23 = vsel %vm1532_vm14, %v1520_v17, %v2244_v59  ;;  %v1538_v14 = vsel %vm1532_vm14, %v1521_v55, %v2245_v11  ;;  %v1563_v22 = vpack.c.bf16 %v1548_v50, %v1547_v47 }
 0x30a   : > { %v1553_v15 = vpack.c.bf16 %v1538_v14, %v1537_v23 }
 0x30b   : > { %1953 = vmatprep.mubr.msk.bf16.mxu0 %vm1026_vm8, %v1554_v3 }
 0x30c   : > { %1717 = vmatmul.mubr.bf16.gmra.mxu0 %v1553_v15 }
 0x30d   : > { %1757 = vmatmul.mubr.bf16.gmra.mxu1 %v1563_v22 }
 0x3ad   : > { %v1726_v40 = vpop.f32.mrf.mxu1 }
 0x3ae   : > { %v1727_v21 = vadd.f32 %v3202_v53, %v1726_v40 }
 0x3af   : > { %v1728_v19 = vpop.f32.mrf.mxu1 }
 0x3b0   : > { %v1771_v58 = vmax.f32 %v1727_v21, 0.0 }
 0x3b1   : > { %v1729_v18 = vpop.f32.mrf.mxu1 }
 0x3b2   : > { %1787 = vst.msk [vmem:[%s3208_s13 + $0x30] sm:$0xff] %vm1026_vm8, %v1771_v58  ;;  %v1730_v24 = vadd.f32 %v3202_v53, %v1729_v18 }
 0x3b3   : > { %v1731_v62 = vpop.f32.mrf.mxu1 }
 0x3b4   : > { %v1772_v4 = vmax.f32 %v1730_v24, 0.0 }
 0x3b5   : > { %v1734_v26 = vpop.f32.mrf.mxu1 }
 0x3b6   : > { %1788 = vst.msk [vmem:[%s3208_s13 + $0x38] sm:$0xff] %vm1026_vm8, %v1772_v4  ;;  %v1735_v27 = vadd.f32 %v3202_v53, %v1734_v26 }
 0x3b7   : > { %v1736_v48 = vpop.f32.mrf.mxu1 }
 0x3b8   : > { %v1773_v34 = vmax.f32 %v1735_v27, 0.0 }
 0x3b9   : > { %v1737_v7 = vpop.f32.mrf.mxu1 }
 0x3ba   : > { %1789 = vst.msk [vmem:[%s3208_s13 + $0x40] sm:$0xff] %vm1026_vm8, %v1773_v34  ;;  %v1738_v36 = vadd.f32 %v3202_v53, %v1737_v7 }
 0x3bb   : > { %v1739_v0 = vpop.f32.mrf.mxu1 }
 0x3bc   : > { %v1774_v29 = vmax.f32 %v1738_v36, 0.0  ;;  %v1702_v28 = vpop.f32.mrf.mxu0 }
 0x3bd   : > { %v1703_v42 = vadd.f32 %v3202_v53, %v1702_v28  ;;  %v1742_v38 = vpop.f32.mrf.mxu1 }
 0x3be   : > { %1790 = vst.msk [vmem:[%s3208_s13 + $0x48] sm:$0xff] %vm1026_vm8, %v1774_v29  ;;  %v1743_v39 = vadd.f32 %v3202_v53, %v1742_v38  ;;  %v1704_v41 = vpop.f32.mrf.mxu0 }
 0x3bf   : > { %v1765_v43 = vmax.f32 %v1703_v42, 0.0  ;;  %v1744_v45 = vpop.f32.mrf.mxu1 }
 0x3c0   : > { %v1775_v46 = vmax.f32 %v1743_v39, 0.0  ;;  %v1705_v49 = vpop.f32.mrf.mxu0 }
 0x3c1   : > { %1781 = vst.msk [vmem:[%s3208_s13] sm:$0xff] %vm1026_vm8, %v1765_v43  ;;  %v1706_v37 = vadd.f32 %v3202_v53, %v1705_v49  ;;  %v1745_v33 = vpop.f32.mrf.mxu1 }
 0x3c2   : > { %1791 = vst.msk [vmem:[%s3208_s13 + $0x50] sm:$0xff] %vm1026_vm8, %v1775_v46  ;;  %v1746_v44 = vadd.f32 %v3202_v53, %v1745_v33  ;;  %v1707_v9 = vpop.f32.mrf.mxu0 }
 0x3c3   : > { %v1766_v52 = vmax.f32 %v1706_v37, 0.0  ;;  %v1747_v54 = vpop.f32.mrf.mxu1 }
 0x3c4   : > { %v1776_v20 = vmax.f32 %v1746_v44, 0.0  ;;  %v1710_v10 = vpop.f32.mrf.mxu0 }
 0x3c5   : > { %1782 = vst.msk [vmem:[%s3208_s13 + $0x8] sm:$0xff] %vm1026_vm8, %v1766_v52  ;;  %v1750_v56 = vpop.f32.mrf.mxu1  ;;  %v1711_v25 = vadd.f32 %v3202_v53, %v1710_v10 }
 0x3c6   : > { %1792 = vst.msk [vmem:[%s3208_s13 + $0x58] sm:$0xff] %vm1026_vm8, %v1776_v20  ;;  %v1751_v51 = vadd.f32 %v3202_v53, %v1750_v56  ;;  %v1712_v30 = vpop.f32.mrf.mxu0 }
 0x3c7   : > { %v1752_v13 = vpop.f32.mrf.mxu1  ;;  %v1767_v57 = vmax.f32 %v1711_v25, 0.0 }
 0x3c8   : > { %v1777_v12 = vmax.f32 %v1751_v51, 0.0  ;;  %v1713_v31 = vpop.f32.mrf.mxu0 }
 0x3c9   : > { %v1753_v60 = vpop.f32.mrf.mxu1  ;;  %1783 = vst.msk [vmem:[%s3208_s13 + $0x10] sm:$0xff] %vm1026_vm8, %v1767_v57  ;;  %v1714_v35 = vadd.f32 %v3202_v53, %v1713_v31 }
 0x3ca   : > { %1793 = vst.msk [vmem:[%s3208_s13 + $0x60] sm:$0xff] %vm1026_vm8, %v1777_v12  ;;  %v1754_v63 = vadd.f32 %v3202_v53, %v1753_v60  ;;  %v1715_v16 = vpop.f32.mrf.mxu0 }
 0x3cb   : > { %v1755_v1 = vpop.f32.mrf.mxu1  ;;  %v1768_v2 = vmax.f32 %v1714_v35, 0.0 }
 0x3cc   : > { %v1778_v5 = vmax.f32 %v1754_v63, 0.0  ;;  %v1718_v6 = vpop.f32.mrf.mxu0 }
 0x3cd   : > { %v1758_v32 = vpop.f32.mrf.mxu1  ;;  %1784 = vst.msk [vmem:[%s3208_s13 + $0x18] sm:$0xff] %vm1026_vm8, %v1768_v2  ;;  %v1719_v8 = vadd.f32 %v3202_v53, %v1718_v6 }
 0x3ce   : > { %1794 = vst.msk [vmem:[%s3208_s13 + $0x68] sm:$0xff] %vm1026_vm8, %v1778_v5  ;;  %v1759_v61 = vadd.f32 %v3202_v53, %v1758_v32  ;;  %v1720_v55 = vpop.f32.mrf.mxu0 }
 0x3cf   : > { %v1760_v11 = vpop.f32.mrf.mxu1  ;;  %v1769_v17 = vmax.f32 %v1719_v8, 0.0 }
 0x3d0   : > { %v1779_v59 = vmax.f32 %v1759_v61, 0.0  ;;  %v1721_v50 = vpop.f32.mrf.mxu0 }
 0x3d1   : > { %v1761_v47 = vpop.f32.mrf.mxu1  ;;  %1785 = vst.msk [vmem:[%s3208_s13 + $0x20] sm:$0xff] %vm1026_vm8, %v1769_v17  ;;  %v1722_v23 = vadd.f32 %v3202_v53, %v1721_v50 }
 0x3d2   : > { %1795 = vst.msk [vmem:[%s3208_s13 + $0x70] sm:$0xff] %vm1026_vm8, %v1779_v59  ;;  %v1762_v3 = vadd.f32 %v3202_v53, %v1761_v47  ;;  %v1723_v22 = vpop.f32.mrf.mxu0 }
 0x3d3   : > { %v1763_v14 = vpop.f32.mrf.mxu1  ;;  %v1770_v40 = vmax.f32 %v1722_v23, 0.0 }
 0x3d4   : > { %v1780_v15 = vmax.f32 %v1762_v3, 0.0 }
 0x3d5   : > { %1786 = vst.msk [vmem:[%s3208_s13 + $0x28] sm:$0xff] %vm1026_vm8, %v1770_v40 }
 0x3d6   : > { %1796 = vst.msk [vmem:[%s3208_s13 + $0x78] sm:$0xff] %vm1026_vm8, %v1780_v15 }
 0x3d7 PF: > { %s15_s22 = sadd.s32 1, %s2325_s22   ;;  %s3298_s18 = smov %s2317_s20 }
 0x3d8   : > { %p12_p7 = scmp.ge.s32.totalorder %s15_s22, 6   ;;  %s3299_s19 = smov %s2321_s21 }
 0x3d9   : > { %s3300_s20 = smov %s3303_s23  ;;  %s3301_s21 = smov %s3307_s24 }
 0x3da   :  { %14 = sbr.rel (!%p12_p7) target bundleno = 3 (0x3), region = 71 }

</bundles_post_ra>
